<compile_context>
chip_gen: v7x
topology: tpu7x:2x2x1
jax: 0.10.0
libtpu: 0.0.40
codegen_flags: <defaults>
</compile_context>

<pallas_src>
import functools

import jax
import jax.numpy as jnp
import numpy as np
from jax.experimental import pallas as pl
from jax.experimental.pallas import tpu as pltpu


# ----------------------------------------------------------------------------
# Kernel: one grid step = (direction, time-chunk).  The hidden state lives in
# VMEM scratch and persists across the (sequential) chunk axis; it is reset at
# chunk 0 of each direction.
# ----------------------------------------------------------------------------
def _maskgru_chunk_kernel(lens_ref, gi_ref, whh_ref, bhn_ref, out_ref, h_ref,
                          *, T, Tp):
    d = pl.program_id(0)           # direction: 0 = forward, 1 = backward
    c = pl.program_id(1)           # time-chunk index (sequential recurrence)
    C = gi_ref.shape[0]            # chunk length
    Hp = h_ref.shape[1]            # padded hidden size (multiple of 128)

    @pl.when(c == 0)
    def _():                       # new direction -> reset the carry
        h_ref[...] = jnp.zeros_like(h_ref)

    lens = lens_ref[...]           # (Bp, 1) int32
    whh = whh_ref[...]             # (Hp, 3Hp)  this direction's W_hh
    bhn = bhn_ref[...]             # (1, Hp)    this direction's b_hh (n-gate)

    def step(i, h):
        # Row inside the chunk: i for the forward stream, C-1-i for the backward
        # stream (its blocks arrive in reversed chunk order via the index_map).
        row = i + d * (C - 1 - 2 * i)
        gi = gi_ref[row]                                              # (Bp, 3Hp)
        gh = jnp.dot(h, whh, preferred_element_type=jnp.float32)      # (Bp, 3Hp)
        # gi already contains b_ih (all gates) and the r/z parts of b_hh.
        r = jax.nn.sigmoid(gi[:, 0:Hp] + gh[:, 0:Hp])
        z = jax.nn.sigmoid(gi[:, Hp:2 * Hp] + gh[:, Hp:2 * Hp])
        n = jnp.tanh(gi[:, 2 * Hp:] + r * (gh[:, 2 * Hp:] + bhn))
        h_new = (1.0 - z) * n + z * h

        # Original time index of this processing step.
        s = c * C + i                        # step within the direction
        t_orig = s + d * (Tp - 1 - 2 * s)    # fwd: s ; bwd: Tp-1-s
        if Tp != T:                          # time-padded steps are identity
            h_new = jnp.where(t_orig < T, h_new, h)

        # Output mask uses the original time index of this step.
        m = (t_orig < lens).astype(jnp.float32)                       # (Bp, 1)
        out_ref[row] = h_new * m
        return h_new

    h_ref[...] = jax.lax.fori_loop(0, C, step, h_ref[...], unroll=True)


# ----------------------------------------------------------------------------
# Wrapper
# ----------------------------------------------------------------------------
def _round_up(x, m):
    return ((x + m - 1) // m) * m


def _pick_chunk(T, max_c=32):
    # Minimize number of chunks, then padded steps, then prefer larger chunks.
    cs = range(1, min(T, max_c) + 1)
    return min(cs, key=lambda c: (-(-T // c), (-T) % c, -c))


def _pad_gate_cols(w, H, Hp):
    """w: (R, 3H), gate-ordered [r|z|n] -> (R, 3Hp) with each gate padded to Hp."""
    out = jnp.zeros((w.shape[0], 3 * Hp), w.dtype)
    for g in range(3):
        out = out.at[:, g * Hp:g * Hp + H].set(w[:, g * H:(g + 1) * H])
    return out


@jax.jit
def mask_gru(x, seq_lens, params):
    """x: (B, T, D) f32; seq_lens: (B,) int; params: raw PyTorch-layout GRU params.

    Returns (B, T, 2H) f32, matching MaskGRU.forward."""
    B, T, D = x.shape
    H = params["whh_f"].shape[1]
    Hp = _round_up(max(H, 128), 128)
    Bp = _round_up(B, 8)
    C = _pick_chunk(T)
    Tp = _round_up(T, C)
    nC = Tp // C

    x = x.astype(jnp.float32)
    seq_lens = seq_lens.astype(jnp.int32)

    # ---- input mask (the same mask is re-applied to the output in-kernel) ----
    mask_in = (jnp.arange(T, dtype=jnp.int32)[None, :] < seq_lens[:, None])
    xm = jnp.transpose(x * mask_in[:, :, None].astype(jnp.float32), (1, 0, 2))  # (T,B,D)
    xm = jnp.pad(xm, ((0, Tp - T), (0, Bp - B), (0, 0)))                         # (Tp,Bp,D)

    # ---- per-direction weight prep (padded to lane-aligned gate blocks) ------
    def dir_params(sfx):
        wih, whh = params["wih_" + sfx], params["whh_" + sfx]      # (3H,D), (3H,H)
        bih, bhh = params["bih_" + sfx], params["bhh_" + sfx]      # (3H,), (3H,)
        wih_p = _pad_gate_cols(jnp.transpose(wih), H, Hp)          # (D, 3Hp)
        whh_p = _pad_gate_cols(jnp.transpose(whh), H, Hp)          # (H, 3Hp)
        whh_p = jnp.pad(whh_p, ((0, Hp - H), (0, 0)))              # (Hp, 3Hp)
        # Fold b_ih (all gates) + the r/z parts of b_hh into the precomputed gi;
        # only the n-gate b_hh must stay inside the kernel (multiplied by r).
        bias = bih + jnp.concatenate([bhh[:2 * H], jnp.zeros((H,), bhh.dtype)])
        bias_p = _pad_gate_cols(bias[None, :], H, Hp)              # (1, 3Hp)
        bhn_p = jnp.zeros((1, Hp), jnp.float32).at[0, :H].set(bhh[2 * H:])
        return wih_p, whh_p, bias_p, bhn_p

    wih_f, whh_f, bias_f, bhn_f = dir_params("f")
    wih_b, whh_b, bias_b, bhn_b = dir_params("b")

    # Column-concatenate the two directions -> the kernel slices direction d via
    # the BlockSpec's last-dim block index (no extra HBM copies of gi).
    wih_all = jnp.concatenate([wih_f, wih_b], axis=1)       # (D, 6Hp)
    bias_all = jnp.concatenate([bias_f, bias_b], axis=1)    # (1, 6Hp)
    whh_all = jnp.concatenate([whh_f, whh_b], axis=1)       # (Hp, 6Hp)
    bhn_all = jnp.concatenate([bhn_f, bhn_b], axis=1)       # (1, 2Hp)

    # ---- hoisted input projection: one big MXU matmul for both directions ----
    gi_all = jnp.einsum("tbd,dk->tbk", xm, wih_all,
                        precision=jax.lax.Precision.HIGHEST) + bias_all  # (Tp,Bp,6Hp)

    lens_p = jnp.pad(seq_lens, (0, Bp - B)).reshape(Bp, 1).astype(jnp.int32)

    # Chunk index along time: forward uses c, backward uses reversed chunks.
    tblk = lambda d, c: c + d * (nC - 1 - 2 * c)

    grid_spec = pltpu.PrefetchScalarGridSpec(
        num_scalar_prefetch=0,
        grid=(2, nC),
        in_specs=[
            pl.BlockSpec((Bp, 1), lambda d, c: (0, 0)),                        # lens
            pl.BlockSpec((C, Bp, 3 * Hp), lambda d, c: (tblk(d, c), 0, d)),    # gi
            pl.BlockSpec((Hp, 3 * Hp), lambda d, c: (0, d)),                   # W_hh
            pl.BlockSpec((1, Hp), lambda d, c: (0, d)),                        # b_hh(n)
        ],
        # Single lane-dense output: fwd -> columns [0:Hp], bwd -> [Hp:2Hp].
        out_specs=pl.BlockSpec((C, Bp, Hp), lambda d, c: (tblk(d, c), 0, d)),
        scratch_shapes=[pltpu.VMEM((Bp, Hp), jnp.float32)],     # per-direction h carry
    )

    out = pl.pallas_call(
        functools.partial(_maskgru_chunk_kernel, T=T, Tp=Tp),
        grid_spec=grid_spec,
        out_shape=jax.ShapeDtypeStruct((Tp, Bp, 2 * Hp), jnp.float32),
        compiler_params=pltpu.CompilerParams(
            # Direction axis independent (v7x: one direction per TensorCore);
            # time-chunk axis is the sequential recurrence -> "arbitrary".
            dimension_semantics=("parallel", "arbitrary"),
            vmem_limit_bytes=64 * 1024 * 1024,
        ),
    )(lens_p, gi_all, whh_all, bhn_all)

    out = out[:T, :B, :]                                           # (T, B, 2Hp)
    if Hp == H:
        res = out
    else:
        res = jnp.concatenate([out[:, :, :H], out[:, :, Hp:Hp + H]], axis=-1)
    return jnp.transpose(res, (1, 0, 2))                           # (B, T, 2H)


# ----------------------------------------------------------------------------
# Pure-JAX reference (mirrors the PyTorch forward) for verification.
# ----------------------------------------------------------------------------
def mask_gru_ref(x, seq_lens, params):
    B, T, D = x.shape
    H = params["whh_f"].shape[1]
    mask = (jnp.arange(T)[None, :] < seq_lens[:, None]).astype(x.dtype)   # (B, T)
    xm = x * mask[:, :, None]

    def direction(xseq, wih, whh, bih, bhh):
        def step(h, xt):
            gi = jnp.dot(xt, wih.T, precision=jax.lax.Precision.HIGHEST) + bih
            gh = jnp.dot(h, whh.T, precision=jax.lax.Precision.HIGHEST) + bhh
            r = jax.nn.sigmoid(gi[:, :H] + gh[:, :H])
            z = jax.nn.sigmoid(gi[:, H:2 * H] + gh[:, H:2 * H])
            n = jnp.tanh(gi[:, 2 * H:] + r * gh[:, 2 * H:])
            hn = (1.0 - z) * n + z * h
            return hn, hn
        h0 = jnp.zeros((B, H), x.dtype)
        _, hs = jax.lax.scan(step, h0, jnp.swapaxes(xseq, 0, 1))
        return jnp.swapaxes(hs, 0, 1)

    Hf = direction(xm, params["wih_f"], params["whh_f"],
                   params["bih_f"], params["bhh_f"])
    Hb = direction(xm[:, ::-1], params["wih_b"], params["whh_b"],
                   params["bih_b"], params["bhh_b"])[:, ::-1]
    return jnp.concatenate([Hf, Hb], axis=-1) * mask[:, :, None]


# ----------------------------------------------------------------------------
# Deterministic parameter init (PyTorch GRU: uniform(-1/sqrt(H), 1/sqrt(H))),
# raw PyTorch layout: W_ih (3H, D), W_hh (3H, H), b_ih (3H,), b_hh (3H,).
# ----------------------------------------------------------------------------
def init_params(key, in_dim, out_dim):
    k = 1.0 / np.sqrt(out_dim)
    shapes = {
        "wih_f": (3 * out_dim, in_dim), "whh_f": (3 * out_dim, out_dim),
        "bih_f": (3 * out_dim,),        "bhh_f": (3 * out_dim,),
        "wih_b": (3 * out_dim, in_dim), "whh_b": (3 * out_dim, out_dim),
        "bih_b": (3 * out_dim,),        "bhh_b": (3 * out_dim,),
    }
    keys = jax.random.split(key, len(shapes))
    return {name: jax.random.uniform(kk, shp, jnp.float32, minval=-k, maxval=k)
            for (name, shp), kk in zip(shapes.items(), keys)}


if __name__ == "__main__":
    B, T, D, H = 2, 8, 16, 32

    key = jax.random.PRNGKey(0)
    kx, kp = jax.random.split(key)
    x = jax.random.normal(kx, (B, T, D), dtype=jnp.float32)
    seq_lens = jnp.array([5, 8], dtype=jnp.int32)
    params = init_params(kp, D, H)

    out = jax.block_until_ready(mask_gru(x, seq_lens, params))
    ref = jax.block_until_ready(mask_gru_ref(x, seq_lens, params))

    assert out.shape == (B, T, 2 * H)
    np.testing.assert_allclose(np.asarray(out), np.asarray(ref),
                               rtol=1e-4, atol=1e-4)
    print("KERNEL_OK")
</pallas_src>

<mosaic_0001>
module attributes {stable_mosaic.version = 11 : i64} {
  func.func @_maskgru_chunk_kernel(%arg0: i32, %arg1: i32, %arg2: memref<8x1xi32, #tpu.memory_space<vmem>>, %arg3: memref<8x8x384xf32, #tpu.memory_space<vmem>>, %arg4: memref<128x384xf32, #tpu.memory_space<vmem>>, %arg5: memref<1x128xf32, #tpu.memory_space<vmem>>, %arg6: memref<8x8x128xf32, #tpu.memory_space<vmem>>, %arg7: memref<8x128xf32, #tpu.memory_space<vmem>>) attributes {dimension_semantics = [#tpu.dimension_semantics<parallel>, #tpu.dimension_semantics<arbitrary>], iteration_bounds = array<i64: 2, 1>, scalar_prefetch = 0 : i64, scratch_operands = 1 : i64, tpu.core_type = #tpu.core_type<tc>, window_params = [{pipeline_mode = #tpu.pipeline_mode<synchronous>, transform_indices = @transform_0, window_bounds = array<i64: 8, 1>}, {transform_indices = @transform_1, window_bounds = array<i64: 8, 8, 384>}, {transform_indices = @transform_2, window_bounds = array<i64: 128, 384>}, {transform_indices = @transform_3, window_bounds = array<i64: 1, 128>}, {transform_indices = @transform_4, window_bounds = array<i64: 8, 8, 128>}]} {
    %c0_i32 = arith.constant 0 : i32
    %0 = arith.cmpi eq, %arg1, %c0_i32 : i32
    %1 = arith.extui %0 : i1 to i32
    %c0_i32_0 = arith.constant 0 : i32
    %2 = arith.cmpi ne, %1, %c0_i32_0 : i32
    scf.if %2 {
      %cst_114 = arith.constant 0.000000e+00 : f32
      %424 = vector.broadcast %cst_114 : f32 to vector<8x128xf32>
      %c0_115 = arith.constant 0 : index
      %c0_116 = arith.constant 0 : index
      %425 = vector.load %arg7[%c0_115, %c0_116] : memref<8x128xf32, #tpu.memory_space<vmem>>, vector<8x128xf32>
      tpu.vector_store %arg7[%c0_115, %c0_116], %424 {strides = array<i32>} : memref<8x128xf32, #tpu.memory_space<vmem>>, vector<8x128xf32>,
    } else {
    }
    %c0 = arith.constant 0 : index
    %c0_1 = arith.constant 0 : index
    %3 = vector.load %arg2[%c0, %c0_1] : memref<8x1xi32, #tpu.memory_space<vmem>>, vector<8x1xi32>
    %c0_2 = arith.constant 0 : index
    %c0_3 = arith.constant 0 : index
    %4 = vector.load %arg4[%c0_2, %c0_3] : memref<128x384xf32, #tpu.memory_space<vmem>>, vector<128x384xf32>
    %c0_4 = arith.constant 0 : index
    %c0_5 = arith.constant 0 : index
    %5 = vector.load %arg5[%c0_4, %c0_5] : memref<1x128xf32, #tpu.memory_space<vmem>>, vector<1x128xf32>
    %c0_6 = arith.constant 0 : index
    %c0_7 = arith.constant 0 : index
    %6 = vector.load %arg7[%c0_6, %c0_7] : memref<8x128xf32, #tpu.memory_space<vmem>>, vector<8x128xf32>
    %c0_i32_8 = arith.constant 0 : i32
    %c2_i32 = arith.constant 2 : i32
    %7 = arith.muli %c2_i32, %c0_i32_8 : i32
    %c7_i32 = arith.constant 7 : i32
    %8 = arith.subi %c7_i32, %7 : i32
    %9 = arith.muli %arg0, %8 : i32
    %10 = arith.addi %c0_i32_8, %9 : i32
    %11 = arith.index_cast %10 : i32 to index
    %c0_9 = arith.constant 0 : index
    %c0_10 = arith.constant 0 : index
    %12 = vector.load %arg3[%11, %c0_9, %c0_10] : memref<8x8x384xf32, #tpu.memory_space<vmem>>, vector<1x8x384xf32>
    %13 = vector.shape_cast %12 : vector<1x8x384xf32> to vector<8x384xf32>
    %cst = arith.constant dense<0.000000e+00> : vector<8x384xf32>
    %14 = tpu.matmul %6, %4, %cst {dimension_numbers = #tpu.dot_dimension_numbers<[1], [0], [0], [1], [0, 0, 1, 1], [], []>} : vector<8x128xf32>, vector<128x384xf32>, vector<8x384xf32> -> vector<8x384xf32>
    %15 = vector.extract_strided_slice %13 {offsets = [0, 0], sizes = [8, 128], strides = [1, 1]} : vector<8x384xf32> to vector<8x128xf32>
    %16 = vector.extract_strided_slice %14 {offsets = [0, 0], sizes = [8, 128], strides = [1, 1]} : vector<8x384xf32> to vector<8x128xf32>
    %17 = arith.addf %15, %16 : vector<8x128xf32>
    %18 = arith.negf %17 : vector<8x128xf32>
    %19 = math.exp %18 : vector<8x128xf32>
    %cst_11 = arith.constant 1.000000e+00 : f32
    %20 = vector.broadcast %cst_11 : f32 to vector<8x128xf32>
    %21 = arith.addf %20, %19 : vector<8x128xf32>
    %22 = arith.divf %20, %21 : vector<8x128xf32>
    %23 = vector.extract_strided_slice %13 {offsets = [0, 128], sizes = [8, 128], strides = [1, 1]} : vector<8x384xf32> to vector<8x128xf32>
    %24 = vector.extract_strided_slice %14 {offsets = [0, 128], sizes = [8, 128], strides = [1, 1]} : vector<8x384xf32> to vector<8x128xf32>
    %25 = arith.addf %23, %24 : vector<8x128xf32>
    %26 = arith.negf %25 : vector<8x128xf32>
    %27 = math.exp %26 : vector<8x128xf32>
    %cst_12 = arith.constant 1.000000e+00 : f32
    %28 = vector.broadcast %cst_12 : f32 to vector<8x128xf32>
    %29 = arith.addf %28, %27 : vector<8x128xf32>
    %30 = arith.divf %28, %29 : vector<8x128xf32>
    %31 = vector.extract_strided_slice %13 {offsets = [0, 256], sizes = [8, 128], strides = [1, 1]} : vector<8x384xf32> to vector<8x128xf32>
    %32 = vector.extract_strided_slice %14 {offsets = [0, 256], sizes = [8, 128], strides = [1, 1]} : vector<8x384xf32> to vector<8x128xf32>
    %33 = vector.broadcast %5 : vector<1x128xf32> to vector<8x128xf32>
    %34 = arith.addf %32, %33 : vector<8x128xf32>
    %35 = arith.mulf %22, %34 : vector<8x128xf32>
    %36 = arith.addf %31, %35 : vector<8x128xf32>
    %37 = math.tanh %36 : vector<8x128xf32>
    %cst_13 = arith.constant 1.000000e+00 : f32
    %38 = vector.broadcast %cst_13 : f32 to vector<8x128xf32>
    %39 = arith.subf %38, %30 : vector<8x128xf32>
    %40 = arith.mulf %39, %37 : vector<8x128xf32>
    %41 = arith.mulf %30, %6 : vector<8x128xf32>
    %42 = arith.addf %40, %41 : vector<8x128xf32>
    %c8_i32 = arith.constant 8 : i32
    %43 = arith.muli %arg1, %c8_i32 : i32
    %44 = arith.addi %43, %c0_i32_8 : i32
    %c2_i32_14 = arith.constant 2 : i32
    %45 = arith.muli %c2_i32_14, %44 : i32
    %c7_i32_15 = arith.constant 7 : i32
    %46 = arith.subi %c7_i32_15, %45 : i32
    %47 = arith.muli %arg0, %46 : i32
    %48 = arith.addi %44, %47 : i32
    %49 = vector.broadcast %48 : i32 to vector<8x1xi32>
    %50 = arith.cmpi slt, %49, %3 : vector<8x1xi32>
    %51 = arith.extui %50 : vector<8x1xi1> to vector<8x1xi32>
    %52 = arith.sitofp %51 : vector<8x1xi32> to vector<8x1xf32>
    %53 = vector.broadcast %52 : vector<8x1xf32> to vector<8x128xf32>
    %54 = arith.mulf %42, %53 : vector<8x128xf32>
    %55 = arith.index_cast %10 : i32 to index
    %c0_16 = arith.constant 0 : index
    %c0_17 = arith.constant 0 : index
    %56 = vector.load %arg6[%55, %c0_16, %c0_17] : memref<8x8x128xf32, #tpu.memory_space<vmem>>, vector<1x8x128xf32>
    %57 = vector.shape_cast %56 : vector<1x8x128xf32> to vector<8x128xf32>
    %58 = vector.shape_cast %54 : vector<8x128xf32> to vector<1x8x128xf32>
    tpu.vector_store %arg6[%55, %c0_16, %c0_17], %58 {strides = array<i32>} : memref<8x8x128xf32, #tpu.memory_space<vmem>>, vector<1x8x128xf32>,
    %c1_i32 = arith.constant 1 : i32
    %c2_i32_18 = arith.constant 2 : i32
    %59 = arith.muli %c2_i32_18, %c1_i32 : i32
    %c7_i32_19 = arith.constant 7 : i32
    %60 = arith.subi %c7_i32_19, %59 : i32
    %61 = arith.muli %arg0, %60 : i32
    %62 = arith.addi %c1_i32, %61 : i32
    %63 = arith.index_cast %62 : i32 to index
    %c0_20 = arith.constant 0 : index
    %c0_21 = arith.constant 0 : index
    %64 = vector.load %arg3[%63, %c0_20, %c0_21] : memref<8x8x384xf32, #tpu.memory_space<vmem>>, vector<1x8x384xf32>
    %65 = vector.shape_cast %64 : vector<1x8x384xf32> to vector<8x384xf32>
    %cst_22 = arith.constant dense<0.000000e+00> : vector<8x384xf32>
    %66 = tpu.matmul %42, %4, %cst_22 {dimension_numbers = #tpu.dot_dimension_numbers<[1], [0], [0], [1], [0, 0, 1, 1], [], []>} : vector<8x128xf32>, vector<128x384xf32>, vector<8x384xf32> -> vector<8x384xf32>
    %67 = vector.extract_strided_slice %65 {offsets = [0, 0], sizes = [8, 128], strides = [1, 1]} : vector<8x384xf32> to vector<8x128xf32>
    %68 = vector.extract_strided_slice %66 {offsets = [0, 0], sizes = [8, 128], strides = [1, 1]} : vector<8x384xf32> to vector<8x128xf32>
    %69 = arith.addf %67, %68 : vector<8x128xf32>
    %70 = arith.negf %69 : vector<8x128xf32>
    %71 = math.exp %70 : vector<8x128xf32>
    %cst_23 = arith.constant 1.000000e+00 : f32
    %72 = vector.broadcast %cst_23 : f32 to vector<8x128xf32>
    %73 = arith.addf %72, %71 : vector<8x128xf32>
    %74 = arith.divf %72, %73 : vector<8x128xf32>
    %75 = vector.extract_strided_slice %65 {offsets = [0, 128], sizes = [8, 128], strides = [1, 1]} : vector<8x384xf32> to vector<8x128xf32>
    %76 = vector.extract_strided_slice %66 {offsets = [0, 128], sizes = [8, 128], strides = [1, 1]} : vector<8x384xf32> to vector<8x128xf32>
    %77 = arith.addf %75, %76 : vector<8x128xf32>
    %78 = arith.negf %77 : vector<8x128xf32>
    %79 = math.exp %78 : vector<8x128xf32>
    %cst_24 = arith.constant 1.000000e+00 : f32
    %80 = vector.broadcast %cst_24 : f32 to vector<8x128xf32>
    %81 = arith.addf %80, %79 : vector<8x128xf32>
    %82 = arith.divf %80, %81 : vector<8x128xf32>
    %83 = vector.extract_strided_slice %65 {offsets = [0, 256], sizes = [8, 128], strides = [1, 1]} : vector<8x384xf32> to vector<8x128xf32>
    %84 = vector.extract_strided_slice %66 {offsets = [0, 256], sizes = [8, 128], strides = [1, 1]} : vector<8x384xf32> to vector<8x128xf32>
    %85 = vector.broadcast %5 : vector<1x128xf32> to vector<8x128xf32>
    %86 = arith.addf %84, %85 : vector<8x128xf32>
    %87 = arith.mulf %74, %86 : vector<8x128xf32>
    %88 = arith.addf %83, %87 : vector<8x128xf32>
    %89 = math.tanh %88 : vector<8x128xf32>
    %cst_25 = arith.constant 1.000000e+00 : f32
    %90 = vector.broadcast %cst_25 : f32 to vector<8x128xf32>
    %91 = arith.subf %90, %82 : vector<8x128xf32>
    %92 = arith.mulf %91, %89 : vector<8x128xf32>
    %93 = arith.mulf %82, %42 : vector<8x128xf32>
    %94 = arith.addf %92, %93 : vector<8x128xf32>
    %c8_i32_26 = arith.constant 8 : i32
    %95 = arith.muli %arg1, %c8_i32_26 : i32
    %96 = arith.addi %95, %c1_i32 : i32
    %c2_i32_27 = arith.constant 2 : i32
    %97 = arith.muli %c2_i32_27, %96 : i32
    %c7_i32_28 = arith.constant 7 : i32
    %98 = arith.subi %c7_i32_28, %97 : i32
    %99 = arith.muli %arg0, %98 : i32
    %100 = arith.addi %96, %99 : i32
    %101 = vector.broadcast %100 : i32 to vector<8x1xi32>
    %102 = arith.cmpi slt, %101, %3 : vector<8x1xi32>
    %103 = arith.extui %102 : vector<8x1xi1> to vector<8x1xi32>
    %104 = arith.sitofp %103 : vector<8x1xi32> to vector<8x1xf32>
    %105 = vector.broadcast %104 : vector<8x1xf32> to vector<8x128xf32>
    %106 = arith.mulf %94, %105 : vector<8x128xf32>
    %107 = arith.index_cast %62 : i32 to index
    %c0_29 = arith.constant 0 : index
    %c0_30 = arith.constant 0 : index
    %108 = vector.load %arg6[%107, %c0_29, %c0_30] : memref<8x8x128xf32, #tpu.memory_space<vmem>>, vector<1x8x128xf32>
    %109 = vector.shape_cast %108 : vector<1x8x128xf32> to vector<8x128xf32>
    %110 = vector.shape_cast %106 : vector<8x128xf32> to vector<1x8x128xf32>
    tpu.vector_store %arg6[%107, %c0_29, %c0_30], %110 {strides = array<i32>} : memref<8x8x128xf32, #tpu.memory_space<vmem>>, vector<1x8x128xf32>,
    %c2_i32_31 = arith.constant 2 : i32
    %c2_i32_32 = arith.constant 2 : i32
    %111 = arith.muli %c2_i32_32, %c2_i32_31 : i32
    %c7_i32_33 = arith.constant 7 : i32
    %112 = arith.subi %c7_i32_33, %111 : i32
    %113 = arith.muli %arg0, %112 : i32
    %114 = arith.addi %c2_i32_31, %113 : i32
    %115 = arith.index_cast %114 : i32 to index
    %c0_34 = arith.constant 0 : index
    %c0_35 = arith.constant 0 : index
    %116 = vector.load %arg3[%115, %c0_34, %c0_35] : memref<8x8x384xf32, #tpu.memory_space<vmem>>, vector<1x8x384xf32>
    %117 = vector.shape_cast %116 : vector<1x8x384xf32> to vector<8x384xf32>
    %cst_36 = arith.constant dense<0.000000e+00> : vector<8x384xf32>
    %118 = tpu.matmul %94, %4, %cst_36 {dimension_numbers = #tpu.dot_dimension_numbers<[1], [0], [0], [1], [0, 0, 1, 1], [], []>} : vector<8x128xf32>, vector<128x384xf32>, vector<8x384xf32> -> vector<8x384xf32>
    %119 = vector.extract_strided_slice %117 {offsets = [0, 0], sizes = [8, 128], strides = [1, 1]} : vector<8x384xf32> to vector<8x128xf32>
    %120 = vector.extract_strided_slice %118 {offsets = [0, 0], sizes = [8, 128], strides = [1, 1]} : vector<8x384xf32> to vector<8x128xf32>
    %121 = arith.addf %119, %120 : vector<8x128xf32>
    %122 = arith.negf %121 : vector<8x128xf32>
    %123 = math.exp %122 : vector<8x128xf32>
    %cst_37 = arith.constant 1.000000e+00 : f32
    %124 = vector.broadcast %cst_37 : f32 to vector<8x128xf32>
    %125 = arith.addf %124, %123 : vector<8x128xf32>
    %126 = arith.divf %124, %125 : vector<8x128xf32>
    %127 = vector.extract_strided_slice %117 {offsets = [0, 128], sizes = [8, 128], strides = [1, 1]} : vector<8x384xf32> to vector<8x128xf32>
    %128 = vector.extract_strided_slice %118 {offsets = [0, 128], sizes = [8, 128], strides = [1, 1]} : vector<8x384xf32> to vector<8x128xf32>
    %129 = arith.addf %127, %128 : vector<8x128xf32>
    %130 = arith.negf %129 : vector<8x128xf32>
    %131 = math.exp %130 : vector<8x128xf32>
    %cst_38 = arith.constant 1.000000e+00 : f32
    %132 = vector.broadcast %cst_38 : f32 to vector<8x128xf32>
    %133 = arith.addf %132, %131 : vector<8x128xf32>
    %134 = arith.divf %132, %133 : vector<8x128xf32>
    %135 = vector.extract_strided_slice %117 {offsets = [0, 256], sizes = [8, 128], strides = [1, 1]} : vector<8x384xf32> to vector<8x128xf32>
    %136 = vector.extract_strided_slice %118 {offsets = [0, 256], sizes = [8, 128], strides = [1, 1]} : vector<8x384xf32> to vector<8x128xf32>
    %137 = vector.broadcast %5 : vector<1x128xf32> to vector<8x128xf32>
    %138 = arith.addf %136, %137 : vector<8x128xf32>
    %139 = arith.mulf %126, %138 : vector<8x128xf32>
    %140 = arith.addf %135, %139 : vector<8x128xf32>
    %141 = math.tanh %140 : vector<8x128xf32>
    %cst_39 = arith.constant 1.000000e+00 : f32
    %142 = vector.broadcast %cst_39 : f32 to vector<8x128xf32>
    %143 = arith.subf %142, %134 : vector<8x128xf32>
    %144 = arith.mulf %143, %141 : vector<8x128xf32>
    %145 = arith.mulf %134, %94 : vector<8x128xf32>
    %146 = arith.addf %144, %145 : vector<8x128xf32>
    %c8_i32_40 = arith.constant 8 : i32
    %147 = arith.muli %arg1, %c8_i32_40 : i32
    %148 = arith.addi %147, %c2_i32_31 : i32
    %c2_i32_41 = arith.constant 2 : i32
    %149 = arith.muli %c2_i32_41, %148 : i32
    %c7_i32_42 = arith.constant 7 : i32
    %150 = arith.subi %c7_i32_42, %149 : i32
    %151 = arith.muli %arg0, %150 : i32
    %152 = arith.addi %148, %151 : i32
    %153 = vector.broadcast %152 : i32 to vector<8x1xi32>
    %154 = arith.cmpi slt, %153, %3 : vector<8x1xi32>
    %155 = arith.extui %154 : vector<8x1xi1> to vector<8x1xi32>
    %156 = arith.sitofp %155 : vector<8x1xi32> to vector<8x1xf32>
    %157 = vector.broadcast %156 : vector<8x1xf32> to vector<8x128xf32>
    %158 = arith.mulf %146, %157 : vector<8x128xf32>
    %159 = arith.index_cast %114 : i32 to index
    %c0_43 = arith.constant 0 : index
    %c0_44 = arith.constant 0 : index
    %160 = vector.load %arg6[%159, %c0_43, %c0_44] : memref<8x8x128xf32, #tpu.memory_space<vmem>>, vector<1x8x128xf32>
    %161 = vector.shape_cast %160 : vector<1x8x128xf32> to vector<8x128xf32>
    %162 = vector.shape_cast %158 : vector<8x128xf32> to vector<1x8x128xf32>
    tpu.vector_store %arg6[%159, %c0_43, %c0_44], %162 {strides = array<i32>} : memref<8x8x128xf32, #tpu.memory_space<vmem>>, vector<1x8x128xf32>,
    %c3_i32 = arith.constant 3 : i32
    %c2_i32_45 = arith.constant 2 : i32
    %163 = arith.muli %c2_i32_45, %c3_i32 : i32
    %c7_i32_46 = arith.constant 7 : i32
    %164 = arith.subi %c7_i32_46, %163 : i32
    %165 = arith.muli %arg0, %164 : i32
    %166 = arith.addi %c3_i32, %165 : i32
    %167 = arith.index_cast %166 : i32 to index
    %c0_47 = arith.constant 0 : index
    %c0_48 = arith.constant 0 : index
    %168 = vector.load %arg3[%167, %c0_47, %c0_48] : memref<8x8x384xf32, #tpu.memory_space<vmem>>, vector<1x8x384xf32>
    %169 = vector.shape_cast %168 : vector<1x8x384xf32> to vector<8x384xf32>
    %cst_49 = arith.constant dense<0.000000e+00> : vector<8x384xf32>
    %170 = tpu.matmul %146, %4, %cst_49 {dimension_numbers = #tpu.dot_dimension_numbers<[1], [0], [0], [1], [0, 0, 1, 1], [], []>} : vector<8x128xf32>, vector<128x384xf32>, vector<8x384xf32> -> vector<8x384xf32>
    %171 = vector.extract_strided_slice %169 {offsets = [0, 0], sizes = [8, 128], strides = [1, 1]} : vector<8x384xf32> to vector<8x128xf32>
    %172 = vector.extract_strided_slice %170 {offsets = [0, 0], sizes = [8, 128], strides = [1, 1]} : vector<8x384xf32> to vector<8x128xf32>
    %173 = arith.addf %171, %172 : vector<8x128xf32>
    %174 = arith.negf %173 : vector<8x128xf32>
    %175 = math.exp %174 : vector<8x128xf32>
    %cst_50 = arith.constant 1.000000e+00 : f32
    %176 = vector.broadcast %cst_50 : f32 to vector<8x128xf32>
    %177 = arith.addf %176, %175 : vector<8x128xf32>
    %178 = arith.divf %176, %177 : vector<8x128xf32>
    %179 = vector.extract_strided_slice %169 {offsets = [0, 128], sizes = [8, 128], strides = [1, 1]} : vector<8x384xf32> to vector<8x128xf32>
    %180 = vector.extract_strided_slice %170 {offsets = [0, 128], sizes = [8, 128], strides = [1, 1]} : vector<8x384xf32> to vector<8x128xf32>
    %181 = arith.addf %179, %180 : vector<8x128xf32>
    %182 = arith.negf %181 : vector<8x128xf32>
    %183 = math.exp %182 : vector<8x128xf32>
    %cst_51 = arith.constant 1.000000e+00 : f32
    %184 = vector.broadcast %cst_51 : f32 to vector<8x128xf32>
    %185 = arith.addf %184, %183 : vector<8x128xf32>
    %186 = arith.divf %184, %185 : vector<8x128xf32>
    %187 = vector.extract_strided_slice %169 {offsets = [0, 256], sizes = [8, 128], strides = [1, 1]} : vector<8x384xf32> to vector<8x128xf32>
    %188 = vector.extract_strided_slice %170 {offsets = [0, 256], sizes = [8, 128], strides = [1, 1]} : vector<8x384xf32> to vector<8x128xf32>
    %189 = vector.broadcast %5 : vector<1x128xf32> to vector<8x128xf32>
    %190 = arith.addf %188, %189 : vector<8x128xf32>
    %191 = arith.mulf %178, %190 : vector<8x128xf32>
    %192 = arith.addf %187, %191 : vector<8x128xf32>
    %193 = math.tanh %192 : vector<8x128xf32>
    %cst_52 = arith.constant 1.000000e+00 : f32
    %194 = vector.broadcast %cst_52 : f32 to vector<8x128xf32>
    %195 = arith.subf %194, %186 : vector<8x128xf32>
    %196 = arith.mulf %195, %193 : vector<8x128xf32>
    %197 = arith.mulf %186, %146 : vector<8x128xf32>
    %198 = arith.addf %196, %197 : vector<8x128xf32>
    %c8_i32_53 = arith.constant 8 : i32
    %199 = arith.muli %arg1, %c8_i32_53 : i32
    %200 = arith.addi %199, %c3_i32 : i32
    %c2_i32_54 = arith.constant 2 : i32
    %201 = arith.muli %c2_i32_54, %200 : i32
    %c7_i32_55 = arith.constant 7 : i32
    %202 = arith.subi %c7_i32_55, %201 : i32
    %203 = arith.muli %arg0, %202 : i32
    %204 = arith.addi %200, %203 : i32
    %205 = vector.broadcast %204 : i32 to vector<8x1xi32>
    %206 = arith.cmpi slt, %205, %3 : vector<8x1xi32>
    %207 = arith.extui %206 : vector<8x1xi1> to vector<8x1xi32>
    %208 = arith.sitofp %207 : vector<8x1xi32> to vector<8x1xf32>
    %209 = vector.broadcast %208 : vector<8x1xf32> to vector<8x128xf32>
    %210 = arith.mulf %198, %209 : vector<8x128xf32>
    %211 = arith.index_cast %166 : i32 to index
    %c0_56 = arith.constant 0 : index
    %c0_57 = arith.constant 0 : index
    %212 = vector.load %arg6[%211, %c0_56, %c0_57] : memref<8x8x128xf32, #tpu.memory_space<vmem>>, vector<1x8x128xf32>
    %213 = vector.shape_cast %212 : vector<1x8x128xf32> to vector<8x128xf32>
    %214 = vector.shape_cast %210 : vector<8x128xf32> to vector<1x8x128xf32>
    tpu.vector_store %arg6[%211, %c0_56, %c0_57], %214 {strides = array<i32>} : memref<8x8x128xf32, #tpu.memory_space<vmem>>, vector<1x8x128xf32>,
    %c4_i32 = arith.constant 4 : i32
    %c2_i32_58 = arith.constant 2 : i32
    %215 = arith.muli %c2_i32_58, %c4_i32 : i32
    %c7_i32_59 = arith.constant 7 : i32
    %216 = arith.subi %c7_i32_59, %215 : i32
    %217 = arith.muli %arg0, %216 : i32
    %218 = arith.addi %c4_i32, %217 : i32
    %219 = arith.index_cast %218 : i32 to index
    %c0_60 = arith.constant 0 : index
    %c0_61 = arith.constant 0 : index
    %220 = vector.load %arg3[%219, %c0_60, %c0_61] : memref<8x8x384xf32, #tpu.memory_space<vmem>>, vector<1x8x384xf32>
    %221 = vector.shape_cast %220 : vector<1x8x384xf32> to vector<8x384xf32>
    %cst_62 = arith.constant dense<0.000000e+00> : vector<8x384xf32>
    %222 = tpu.matmul %198, %4, %cst_62 {dimension_numbers = #tpu.dot_dimension_numbers<[1], [0], [0], [1], [0, 0, 1, 1], [], []>} : vector<8x128xf32>, vector<128x384xf32>, vector<8x384xf32> -> vector<8x384xf32>
    %223 = vector.extract_strided_slice %221 {offsets = [0, 0], sizes = [8, 128], strides = [1, 1]} : vector<8x384xf32> to vector<8x128xf32>
    %224 = vector.extract_strided_slice %222 {offsets = [0, 0], sizes = [8, 128], strides = [1, 1]} : vector<8x384xf32> to vector<8x128xf32>
    %225 = arith.addf %223, %224 : vector<8x128xf32>
    %226 = arith.negf %225 : vector<8x128xf32>
    %227 = math.exp %226 : vector<8x128xf32>
    %cst_63 = arith.constant 1.000000e+00 : f32
    %228 = vector.broadcast %cst_63 : f32 to vector<8x128xf32>
    %229 = arith.addf %228, %227 : vector<8x128xf32>
    %230 = arith.divf %228, %229 : vector<8x128xf32>
    %231 = vector.extract_strided_slice %221 {offsets = [0, 128], sizes = [8, 128], strides = [1, 1]} : vector<8x384xf32> to vector<8x128xf32>
    %232 = vector.extract_strided_slice %222 {offsets = [0, 128], sizes = [8, 128], strides = [1, 1]} : vector<8x384xf32> to vector<8x128xf32>
    %233 = arith.addf %231, %232 : vector<8x128xf32>
    %234 = arith.negf %233 : vector<8x128xf32>
    %235 = math.exp %234 : vector<8x128xf32>
    %cst_64 = arith.constant 1.000000e+00 : f32
    %236 = vector.broadcast %cst_64 : f32 to vector<8x128xf32>
    %237 = arith.addf %236, %235 : vector<8x128xf32>
    %238 = arith.divf %236, %237 : vector<8x128xf32>
    %239 = vector.extract_strided_slice %221 {offsets = [0, 256], sizes = [8, 128], strides = [1, 1]} : vector<8x384xf32> to vector<8x128xf32>
    %240 = vector.extract_strided_slice %222 {offsets = [0, 256], sizes = [8, 128], strides = [1, 1]} : vector<8x384xf32> to vector<8x128xf32>
    %241 = vector.broadcast %5 : vector<1x128xf32> to vector<8x128xf32>
    %242 = arith.addf %240, %241 : vector<8x128xf32>
    %243 = arith.mulf %230, %242 : vector<8x128xf32>
    %244 = arith.addf %239, %243 : vector<8x128xf32>
    %245 = math.tanh %244 : vector<8x128xf32>
    %cst_65 = arith.constant 1.000000e+00 : f32
    %246 = vector.broadcast %cst_65 : f32 to vector<8x128xf32>
    %247 = arith.subf %246, %238 : vector<8x128xf32>
    %248 = arith.mulf %247, %245 : vector<8x128xf32>
    %249 = arith.mulf %238, %198 : vector<8x128xf32>
    %250 = arith.addf %248, %249 : vector<8x128xf32>
    %c8_i32_66 = arith.constant 8 : i32
    %251 = arith.muli %arg1, %c8_i32_66 : i32
    %252 = arith.addi %251, %c4_i32 : i32
    %c2_i32_67 = arith.constant 2 : i32
    %253 = arith.muli %c2_i32_67, %252 : i32
    %c7_i32_68 = arith.constant 7 : i32
    %254 = arith.subi %c7_i32_68, %253 : i32
    %255 = arith.muli %arg0, %254 : i32
    %256 = arith.addi %252, %255 : i32
    %257 = vector.broadcast %256 : i32 to vector<8x1xi32>
    %258 = arith.cmpi slt, %257, %3 : vector<8x1xi32>
    %259 = arith.extui %258 : vector<8x1xi1> to vector<8x1xi32>
    %260 = arith.sitofp %259 : vector<8x1xi32> to vector<8x1xf32>
    %261 = vector.broadcast %260 : vector<8x1xf32> to vector<8x128xf32>
    %262 = arith.mulf %250, %261 : vector<8x128xf32>
    %263 = arith.index_cast %218 : i32 to index
    %c0_69 = arith.constant 0 : index
    %c0_70 = arith.constant 0 : index
    %264 = vector.load %arg6[%263, %c0_69, %c0_70] : memref<8x8x128xf32, #tpu.memory_space<vmem>>, vector<1x8x128xf32>
    %265 = vector.shape_cast %264 : vector<1x8x128xf32> to vector<8x128xf32>
    %266 = vector.shape_cast %262 : vector<8x128xf32> to vector<1x8x128xf32>
    tpu.vector_store %arg6[%263, %c0_69, %c0_70], %266 {strides = array<i32>} : memref<8x8x128xf32, #tpu.memory_space<vmem>>, vector<1x8x128xf32>,
    %c5_i32 = arith.constant 5 : i32
    %c2_i32_71 = arith.constant 2 : i32
    %267 = arith.muli %c2_i32_71, %c5_i32 : i32
    %c7_i32_72 = arith.constant 7 : i32
    %268 = arith.subi %c7_i32_72, %267 : i32
    %269 = arith.muli %arg0, %268 : i32
    %270 = arith.addi %c5_i32, %269 : i32
    %271 = arith.index_cast %270 : i32 to index
    %c0_73 = arith.constant 0 : index
    %c0_74 = arith.constant 0 : index
    %272 = vector.load %arg3[%271, %c0_73, %c0_74] : memref<8x8x384xf32, #tpu.memory_space<vmem>>, vector<1x8x384xf32>
    %273 = vector.shape_cast %272 : vector<1x8x384xf32> to vector<8x384xf32>
    %cst_75 = arith.constant dense<0.000000e+00> : vector<8x384xf32>
    %274 = tpu.matmul %250, %4, %cst_75 {dimension_numbers = #tpu.dot_dimension_numbers<[1], [0], [0], [1], [0, 0, 1, 1], [], []>} : vector<8x128xf32>, vector<128x384xf32>, vector<8x384xf32> -> vector<8x384xf32>
    %275 = vector.extract_strided_slice %273 {offsets = [0, 0], sizes = [8, 128], strides = [1, 1]} : vector<8x384xf32> to vector<8x128xf32>
    %276 = vector.extract_strided_slice %274 {offsets = [0, 0], sizes = [8, 128], strides = [1, 1]} : vector<8x384xf32> to vector<8x128xf32>
    %277 = arith.addf %275, %276 : vector<8x128xf32>
    %278 = arith.negf %277 : vector<8x128xf32>
    %279 = math.exp %278 : vector<8x128xf32>
    %cst_76 = arith.constant 1.000000e+00 : f32
    %280 = vector.broadcast %cst_76 : f32 to vector<8x128xf32>
    %281 = arith.addf %280, %279 : vector<8x128xf32>
    %282 = arith.divf %280, %281 : vector<8x128xf32>
    %283 = vector.extract_strided_slice %273 {offsets = [0, 128], sizes = [8, 128], strides = [1, 1]} : vector<8x384xf32> to vector<8x128xf32>
    %284 = vector.extract_strided_slice %274 {offsets = [0, 128], sizes = [8, 128], strides = [1, 1]} : vector<8x384xf32> to vector<8x128xf32>
    %285 = arith.addf %283, %284 : vector<8x128xf32>
    %286 = arith.negf %285 : vector<8x128xf32>
    %287 = math.exp %286 : vector<8x128xf32>
    %cst_77 = arith.constant 1.000000e+00 : f32
    %288 = vector.broadcast %cst_77 : f32 to vector<8x128xf32>
    %289 = arith.addf %288, %287 : vector<8x128xf32>
    %290 = arith.divf %288, %289 : vector<8x128xf32>
    %291 = vector.extract_strided_slice %273 {offsets = [0, 256], sizes = [8, 128], strides = [1, 1]} : vector<8x384xf32> to vector<8x128xf32>
    %292 = vector.extract_strided_slice %274 {offsets = [0, 256], sizes = [8, 128], strides = [1, 1]} : vector<8x384xf32> to vector<8x128xf32>
    %293 = vector.broadcast %5 : vector<1x128xf32> to vector<8x128xf32>
    %294 = arith.addf %292, %293 : vector<8x128xf32>
    %295 = arith.mulf %282, %294 : vector<8x128xf32>
    %296 = arith.addf %291, %295 : vector<8x128xf32>
    %297 = math.tanh %296 : vector<8x128xf32>
    %cst_78 = arith.constant 1.000000e+00 : f32
    %298 = vector.broadcast %cst_78 : f32 to vector<8x128xf32>
    %299 = arith.subf %298, %290 : vector<8x128xf32>
    %300 = arith.mulf %299, %297 : vector<8x128xf32>
    %301 = arith.mulf %290, %250 : vector<8x128xf32>
    %302 = arith.addf %300, %301 : vector<8x128xf32>
    %c8_i32_79 = arith.constant 8 : i32
    %303 = arith.muli %arg1, %c8_i32_79 : i32
    %304 = arith.addi %303, %c5_i32 : i32
    %c2_i32_80 = arith.constant 2 : i32
    %305 = arith.muli %c2_i32_80, %304 : i32
    %c7_i32_81 = arith.constant 7 : i32
    %306 = arith.subi %c7_i32_81, %305 : i32
    %307 = arith.muli %arg0, %306 : i32
    %308 = arith.addi %304, %307 : i32
    %309 = vector.broadcast %308 : i32 to vector<8x1xi32>
    %310 = arith.cmpi slt, %309, %3 : vector<8x1xi32>
    %311 = arith.extui %310 : vector<8x1xi1> to vector<8x1xi32>
    %312 = arith.sitofp %311 : vector<8x1xi32> to vector<8x1xf32>
    %313 = vector.broadcast %312 : vector<8x1xf32> to vector<8x128xf32>
    %314 = arith.mulf %302, %313 : vector<8x128xf32>
    %315 = arith.index_cast %270 : i32 to index
    %c0_82 = arith.constant 0 : index
    %c0_83 = arith.constant 0 : index
    %316 = vector.load %arg6[%315, %c0_82, %c0_83] : memref<8x8x128xf32, #tpu.memory_space<vmem>>, vector<1x8x128xf32>
    %317 = vector.shape_cast %316 : vector<1x8x128xf32> to vector<8x128xf32>
    %318 = vector.shape_cast %314 : vector<8x128xf32> to vector<1x8x128xf32>
    tpu.vector_store %arg6[%315, %c0_82, %c0_83], %318 {strides = array<i32>} : memref<8x8x128xf32, #tpu.memory_space<vmem>>, vector<1x8x128xf32>,
    %c6_i32 = arith.constant 6 : i32
    %c2_i32_84 = arith.constant 2 : i32
    %319 = arith.muli %c2_i32_84, %c6_i32 : i32
    %c7_i32_85 = arith.constant 7 : i32
    %320 = arith.subi %c7_i32_85, %319 : i32
    %321 = arith.muli %arg0, %320 : i32
    %322 = arith.addi %c6_i32, %321 : i32
    %323 = arith.index_cast %322 : i32 to index
    %c0_86 = arith.constant 0 : index
    %c0_87 = arith.constant 0 : index
    %324 = vector.load %arg3[%323, %c0_86, %c0_87] : memref<8x8x384xf32, #tpu.memory_space<vmem>>, vector<1x8x384xf32>
    %325 = vector.shape_cast %324 : vector<1x8x384xf32> to vector<8x384xf32>
    %cst_88 = arith.constant dense<0.000000e+00> : vector<8x384xf32>
    %326 = tpu.matmul %302, %4, %cst_88 {dimension_numbers = #tpu.dot_dimension_numbers<[1], [0], [0], [1], [0, 0, 1, 1], [], []>} : vector<8x128xf32>, vector<128x384xf32>, vector<8x384xf32> -> vector<8x384xf32>
    %327 = vector.extract_strided_slice %325 {offsets = [0, 0], sizes = [8, 128], strides = [1, 1]} : vector<8x384xf32> to vector<8x128xf32>
    %328 = vector.extract_strided_slice %326 {offsets = [0, 0], sizes = [8, 128], strides = [1, 1]} : vector<8x384xf32> to vector<8x128xf32>
    %329 = arith.addf %327, %328 : vector<8x128xf32>
    %330 = arith.negf %329 : vector<8x128xf32>
    %331 = math.exp %330 : vector<8x128xf32>
    %cst_89 = arith.constant 1.000000e+00 : f32
    %332 = vector.broadcast %cst_89 : f32 to vector<8x128xf32>
    %333 = arith.addf %332, %331 : vector<8x128xf32>
    %334 = arith.divf %332, %333 : vector<8x128xf32>
    %335 = vector.extract_strided_slice %325 {offsets = [0, 128], sizes = [8, 128], strides = [1, 1]} : vector<8x384xf32> to vector<8x128xf32>
    %336 = vector.extract_strided_slice %326 {offsets = [0, 128], sizes = [8, 128], strides = [1, 1]} : vector<8x384xf32> to vector<8x128xf32>
    %337 = arith.addf %335, %336 : vector<8x128xf32>
    %338 = arith.negf %337 : vector<8x128xf32>
    %339 = math.exp %338 : vector<8x128xf32>
    %cst_90 = arith.constant 1.000000e+00 : f32
    %340 = vector.broadcast %cst_90 : f32 to vector<8x128xf32>
    %341 = arith.addf %340, %339 : vector<8x128xf32>
    %342 = arith.divf %340, %341 : vector<8x128xf32>
    %343 = vector.extract_strided_slice %325 {offsets = [0, 256], sizes = [8, 128], strides = [1, 1]} : vector<8x384xf32> to vector<8x128xf32>
    %344 = vector.extract_strided_slice %326 {offsets = [0, 256], sizes = [8, 128], strides = [1, 1]} : vector<8x384xf32> to vector<8x128xf32>
    %345 = vector.broadcast %5 : vector<1x128xf32> to vector<8x128xf32>
    %346 = arith.addf %344, %345 : vector<8x128xf32>
    %347 = arith.mulf %334, %346 : vector<8x128xf32>
    %348 = arith.addf %343, %347 : vector<8x128xf32>
    %349 = math.tanh %348 : vector<8x128xf32>
    %cst_91 = arith.constant 1.000000e+00 : f32
    %350 = vector.broadcast %cst_91 : f32 to vector<8x128xf32>
    %351 = arith.subf %350, %342 : vector<8x128xf32>
    %352 = arith.mulf %351, %349 : vector<8x128xf32>
    %353 = arith.mulf %342, %302 : vector<8x128xf32>
    %354 = arith.addf %352, %353 : vector<8x128xf32>
    %c8_i32_92 = arith.constant 8 : i32
    %355 = arith.muli %arg1, %c8_i32_92 : i32
    %356 = arith.addi %355, %c6_i32 : i32
    %c2_i32_93 = arith.constant 2 : i32
    %357 = arith.muli %c2_i32_93, %356 : i32
    %c7_i32_94 = arith.constant 7 : i32
    %358 = arith.subi %c7_i32_94, %357 : i32
    %359 = arith.muli %arg0, %358 : i32
    %360 = arith.addi %356, %359 : i32
    %361 = vector.broadcast %360 : i32 to vector<8x1xi32>
    %362 = arith.cmpi slt, %361, %3 : vector<8x1xi32>
    %363 = arith.extui %362 : vector<8x1xi1> to vector<8x1xi32>
    %364 = arith.sitofp %363 : vector<8x1xi32> to vector<8x1xf32>
    %365 = vector.broadcast %364 : vector<8x1xf32> to vector<8x128xf32>
    %366 = arith.mulf %354, %365 : vector<8x128xf32>
    %367 = arith.index_cast %322 : i32 to index
    %c0_95 = arith.constant 0 : index
    %c0_96 = arith.constant 0 : index
    %368 = vector.load %arg6[%367, %c0_95, %c0_96] : memref<8x8x128xf32, #tpu.memory_space<vmem>>, vector<1x8x128xf32>
    %369 = vector.shape_cast %368 : vector<1x8x128xf32> to vector<8x128xf32>
    %370 = vector.shape_cast %366 : vector<8x128xf32> to vector<1x8x128xf32>
    tpu.vector_store %arg6[%367, %c0_95, %c0_96], %370 {strides = array<i32>} : memref<8x8x128xf32, #tpu.memory_space<vmem>>, vector<1x8x128xf32>,
    %c7_i32_97 = arith.constant 7 : i32
    %c2_i32_98 = arith.constant 2 : i32
    %371 = arith.muli %c2_i32_98, %c7_i32_97 : i32
    %c7_i32_99 = arith.constant 7 : i32
    %372 = arith.subi %c7_i32_99, %371 : i32
    %373 = arith.muli %arg0, %372 : i32
    %374 = arith.addi %c7_i32_97, %373 : i32
    %375 = arith.index_cast %374 : i32 to index
    %c0_100 = arith.constant 0 : index
    %c0_101 = arith.constant 0 : index
    %376 = vector.load %arg3[%375, %c0_100, %c0_101] : memref<8x8x384xf32, #tpu.memory_space<vmem>>, vector<1x8x384xf32>
    %377 = vector.shape_cast %376 : vector<1x8x384xf32> to vector<8x384xf32>
    %cst_102 = arith.constant dense<0.000000e+00> : vector<8x384xf32>
    %378 = tpu.matmul %354, %4, %cst_102 {dimension_numbers = #tpu.dot_dimension_numbers<[1], [0], [0], [1], [0, 0, 1, 1], [], []>} : vector<8x128xf32>, vector<128x384xf32>, vector<8x384xf32> -> vector<8x384xf32>
    %379 = vector.extract_strided_slice %377 {offsets = [0, 0], sizes = [8, 128], strides = [1, 1]} : vector<8x384xf32> to vector<8x128xf32>
    %380 = vector.extract_strided_slice %378 {offsets = [0, 0], sizes = [8, 128], strides = [1, 1]} : vector<8x384xf32> to vector<8x128xf32>
    %381 = arith.addf %379, %380 : vector<8x128xf32>
    %382 = arith.negf %381 : vector<8x128xf32>
    %383 = math.exp %382 : vector<8x128xf32>
    %cst_103 = arith.constant 1.000000e+00 : f32
    %384 = vector.broadcast %cst_103 : f32 to vector<8x128xf32>
    %385 = arith.addf %384, %383 : vector<8x128xf32>
    %386 = arith.divf %384, %385 : vector<8x128xf32>
    %387 = vector.extract_strided_slice %377 {offsets = [0, 128], sizes = [8, 128], strides = [1, 1]} : vector<8x384xf32> to vector<8x128xf32>
    %388 = vector.extract_strided_slice %378 {offsets = [0, 128], sizes = [8, 128], strides = [1, 1]} : vector<8x384xf32> to vector<8x128xf32>
    %389 = arith.addf %387, %388 : vector<8x128xf32>
    %390 = arith.negf %389 : vector<8x128xf32>
    %391 = math.exp %390 : vector<8x128xf32>
    %cst_104 = arith.constant 1.000000e+00 : f32
    %392 = vector.broadcast %cst_104 : f32 to vector<8x128xf32>
    %393 = arith.addf %392, %391 : vector<8x128xf32>
    %394 = arith.divf %392, %393 : vector<8x128xf32>
    %395 = vector.extract_strided_slice %377 {offsets = [0, 256], sizes = [8, 128], strides = [1, 1]} : vector<8x384xf32> to vector<8x128xf32>
    %396 = vector.extract_strided_slice %378 {offsets = [0, 256], sizes = [8, 128], strides = [1, 1]} : vector<8x384xf32> to vector<8x128xf32>
    %397 = vector.broadcast %5 : vector<1x128xf32> to vector<8x128xf32>
    %398 = arith.addf %396, %397 : vector<8x128xf32>
    %399 = arith.mulf %386, %398 : vector<8x128xf32>
    %400 = arith.addf %395, %399 : vector<8x128xf32>
    %401 = math.tanh %400 : vector<8x128xf32>
    %cst_105 = arith.constant 1.000000e+00 : f32
    %402 = vector.broadcast %cst_105 : f32 to vector<8x128xf32>
    %403 = arith.subf %402, %394 : vector<8x128xf32>
    %404 = arith.mulf %403, %401 : vector<8x128xf32>
    %405 = arith.mulf %394, %354 : vector<8x128xf32>
    %406 = arith.addf %404, %405 : vector<8x128xf32>
    %c8_i32_106 = arith.constant 8 : i32
    %407 = arith.muli %arg1, %c8_i32_106 : i32
    %408 = arith.addi %407, %c7_i32_97 : i32
    %c2_i32_107 = arith.constant 2 : i32
    %409 = arith.muli %c2_i32_107, %408 : i32
    %c7_i32_108 = arith.constant 7 : i32
    %410 = arith.subi %c7_i32_108, %409 : i32
    %411 = arith.muli %arg0, %410 : i32
    %412 = arith.addi %408, %411 : i32
    %413 = vector.broadcast %412 : i32 to vector<8x1xi32>
    %414 = arith.cmpi slt, %413, %3 : vector<8x1xi32>
    %415 = arith.extui %414 : vector<8x1xi1> to vector<8x1xi32>
    %416 = arith.sitofp %415 : vector<8x1xi32> to vector<8x1xf32>
    %417 = vector.broadcast %416 : vector<8x1xf32> to vector<8x128xf32>
    %418 = arith.mulf %406, %417 : vector<8x128xf32>
    %419 = arith.index_cast %374 : i32 to index
    %c0_109 = arith.constant 0 : index
    %c0_110 = arith.constant 0 : index
    %420 = vector.load %arg6[%419, %c0_109, %c0_110] : memref<8x8x128xf32, #tpu.memory_space<vmem>>, vector<1x8x128xf32>
    %421 = vector.shape_cast %420 : vector<1x8x128xf32> to vector<8x128xf32>
    %422 = vector.shape_cast %418 : vector<8x128xf32> to vector<1x8x128xf32>
    tpu.vector_store %arg6[%419, %c0_109, %c0_110], %422 {strides = array<i32>} : memref<8x8x128xf32, #tpu.memory_space<vmem>>, vector<1x8x128xf32>,
    %c8_i32_111 = arith.constant 8 : i32
    %c0_112 = arith.constant 0 : index
    %c0_113 = arith.constant 0 : index
    %423 = vector.load %arg7[%c0_112, %c0_113] : memref<8x128xf32, #tpu.memory_space<vmem>>, vector<8x128xf32>
    tpu.vector_store %arg7[%c0_112, %c0_113], %406 {strides = array<i32>} : memref<8x128xf32, #tpu.memory_space<vmem>>, vector<8x128xf32>,
    return
  }
  func.func @transform_0(%arg0: i32, %arg1: i32) -> (i32, i32) {
    %c0_i32 = arith.constant 0 : i32
    %c0_i32_0 = arith.constant 0 : i32
    %c0_i32_1 = arith.constant 0 : i32
    return %c0_i32, %c0_i32_0 : i32, i32
  }
  func.func @transform_1(%arg0: i32, %arg1: i32) -> (i32, i32, i32) {
    %c2_i32 = arith.constant 2 : i32
    %0 = arith.muli %c2_i32, %arg1 : i32
    %c0_i32 = arith.constant 0 : i32
    %1 = arith.subi %c0_i32, %0 : i32
    %2 = arith.muli %arg0, %1 : i32
    %3 = arith.addi %arg1, %2 : i32
    %c0_i32_0 = arith.constant 0 : i32
    %c0_i32_1 = arith.constant 0 : i32
    return %3, %c0_i32_0, %arg0 : i32, i32, i32
  }
  func.func @transform_2(%arg0: i32, %arg1: i32) -> (i32, i32) {
    %c0_i32 = arith.constant 0 : i32
    %c0_i32_0 = arith.constant 0 : i32
    return %c0_i32, %arg0 : i32, i32
  }
  func.func @transform_3(%arg0: i32, %arg1: i32) -> (i32, i32) {
    %c0_i32 = arith.constant 0 : i32
    %c0_i32_0 = arith.constant 0 : i32
    return %c0_i32, %arg0 : i32, i32
  }
  func.func @transform_4(%arg0: i32, %arg1: i32) -> (i32, i32, i32) {
    %c2_i32 = arith.constant 2 : i32
    %0 = arith.muli %c2_i32, %arg1 : i32
    %c0_i32 = arith.constant 0 : i32
    %1 = arith.subi %c0_i32, %0 : i32
    %2 = arith.muli %arg0, %1 : i32
    %3 = arith.addi %arg1, %2 : i32
    %c0_i32_0 = arith.constant 0 : i32
    %c0_i32_1 = arith.constant 0 : i32
    return %3, %c0_i32_0, %arg0 : i32, i32, i32
  }
}

</mosaic_0001>

<bundles_post_ra>
// kernel: mask_gru.1
= control target key start
LH: loop header
LB: loop body
LE: loop exit
PB: predicated region body
PF: predicated region fallthrough
CT: control target
= control target key end

     0   :  { %s4344_s0 = inlined_call_operand.hbm [shape: s32[8,1], index: 0, kind: input, shape index: {}]   ;;  %s4345_s1 = inlined_call_operand.hbm [shape: f32[8,8,768], index: 1, kind: input, shape index: {}]   ;;  %s4346_s2 = inlined_call_operand.hbm [shape: f32[128,768], index: 2, kind: input, shape index: {}]   ;;  %s4347_s3 = inlined_call_operand.hbm [shape: f32[1,256], index: 3, kind: input, shape index: {}]   ;;  %s4348_s4 = inlined_call_operand.hbm [shape: f32[8,8,256], index: 4, kind: output, shape index: {}]  }
   0x1   :  { %4363 = sst [smem:[#allocation19_spill]] %s4345_s1 }
   0x2   :  { %4364 = sst [smem:[#allocation20_spill]] %s4346_s2 }
   0x3   :  { %9 = vsyncpa [#allocation4], 0 }
   0x4   :  { %10 = vsyncpa [#allocation7], 0 }
   0x5   :  { %12 = vsyncpa [#allocation7 + $0x1], 0 }
   0x6   :  { %13 = vsyncpa [#allocation10], 0 }
   0x7   :  { %15 = vsyncpa [#allocation10 + $0x1], 0 }
   0x8   :  { %16 = vsyncpa [#allocation5], 0 }
   0x9   :  { %18 = vsyncpa [#allocation5 + $0x1], 0  ;;  %s3535_s15 = smov 0   ;;  %s3537_s16 = smov 0  }
   0xa   :  { %s3539_s17 = smov 0   ;;  %s3541_s18 = smov 0  }
   0xb   :  { %s3543_s19 = smov 0   ;;  %s3545_s20 = smov 0  }
   0xc LB: > { %4365 = sst [smem:[#allocation16_spill]] %s3481_s17  ;;  %s36_s21 = sadd.s32 1, %s3489_s19  ;;  %s3493_s20 = sphi %s3545_s20, %s24_s20   ;;  %s3489_s19 = sphi %s3543_s19, %s4397_s19   ;;  %s3485_s18 = sphi %s3541_s18, %s4396_s18   ;;  %s3481_s17 = sphi %s3539_s17, %s4392_s17   ;;  %s3477_s16 = sphi %s3537_s16, %s4395_s16   ;;  %s3473_s15 = sphi %s3535_s15, %s4394_s15  }
   0xd   : > { %s74_s22 = sadd.s32 1, %s3481_s17  ;;  %p38_p0 = scmp.ge.s32.totalorder %s36_s21, 2 }
   0xe   : > { %p4349_p1 = scmp.ne.s32.totalorder %s3481_s17, %s3477_s16  ;;  %p82_p2 = scmp.eq.s32.totalorder %s3493_s20, 0 }
   0xf   : > { %s4399_s21 = smov (%p38_p0, %s36_s21), 0  ;;  %p3120_p5 = scmp.lt.s32.totalorder %s3493_s20, 2 }
  0x10   : > { %4366 = sst [smem:[#allocation17_spill]] %s4399_s21  ;;  %p83_p4 = por %p82_p2, %p4349_p1 }
  0x11   : > { %s70_s23 = ssub.s32 %s3489_s19, %s4399_s21  ;;  %s210_s24 = sand.u32 1, %s3493_s20  }
  0x12   : > { %p72_p6 = scmp.eq.s32.totalorder %s70_s23, 0  ;;  %s3581_s25 = sand.u32 1, %s3481_s17  }
  0x13   : > { %s2217_s26 = smul.u32 384, %s3489_s19  ;;  %s4368_s1 = sld [smem:[#allocation19_spill]] }
  0x14   : > { %s3585_s27 = scalar_select %p72_p6, %s3481_s17, %s74_s22  }
  0x15   : > { %s3085_s28 = smul.u32 192, %s3581_s25  ;;  %p3595_p7 = pnand %p3120_p5, %p83_p4 }
  0x16   : > { %4367 = sst [smem:[#allocation18_spill]] %s3585_s27  ;;  %s3601_s9 = scalar_lea.sflag [#allocation7], %s210_s24 }
  0x17   : > { %s4369_s6 = scalar_select %p3595_p7, 1, 0 }
  0x18   : > { %s214_s7 = scalar_lea.vmem [#allocation6], %s3085_s28  ;;  %p3607_p9 = pneg %p3595_p7 }
  0x19   : > { %s3593_s5 = scalar_lea.hbm %s4368_s1, %s2217_s26  ;;  %s228_s8 = sshll.u32 %s214_s7, 4  ;;  %s3599_s8 = int_to_ptr.vmem [resolvable:$true] %s228_s8 }
  0x1a   : > { %s3285_s10 = scalar_lea.hbm %s3593_s5, 3072  ;;  %s3290_s14 = scalar_lea.hbm %s4368_s1, 6144 }
  0x1b   : > { %p3286_p8 = scmp.ne.s32.totalorder %s3593_s5, %s3285_s10  ;;  %p3291_p12 = scmp.lt.u32.totalorder %s3593_s5, %s4368_s1 }
  0x1c   : > { %s4370_s11 = scalar_select %p3607_p9, 1, 0 }
  0x1d   : > { %p3288_p10 = pnand %p3607_p9, %p3286_p8  ;;  %p3292_p13 = scmp.lt.u32.totalorder %s3290_s14, %s3285_s10 }
  0x1e   : > { %p3294_p2 = scmp.lt.u32.totalorder %s3285_s10, %s3593_s5 }
  0x1f   : > { %p3289_p11 = pneg %p3288_p10  ;;  %p3293_p0 = por %p3292_p13, %p3291_p12 }
  0x21   : > { %p3295_p4 = por %p3294_p2, %p3293_p0 }
  0x23   : > { %p3296_p5 = pnand %p3295_p4, %p3289_p11 }
  0x25   : > { %3299 = shalt.err (!%p3296_p5)
}
  0x26   : > { %s3300_s24 = scalar_lea.vmem %s3599_s8, 3072  ;;  %s3495_s28 = smov [#allocation6]  }
  0x27   : > { %p3301_p6 = scmp.ne.s32.totalorder %s3599_s8, %s3300_s24  ;;  %s3305_s29 = sshll.u32 %s3495_s28, 4  ;;  %s3306_s29 = int_to_ptr.vmem [resolvable:$false] %s3305_s29 }
  0x28   : > { %s3307_s30 = scalar_lea.vmem %s3306_s29, 6144  ;;  %p3308_p3 = scmp.lt.s32.totalorder %s3599_s8, %s3306_s29 }
  0x29   : > { %p3303_p8 = pnand %p3301_p6, %p3607_p9  ;;  %p3309_p1 = scmp.lt.s32.totalorder %s3307_s30, %s3300_s24 }
  0x2b   : > { %p3304_p10 = pneg %p3303_p8  ;;  %p3310_p12 = por %p3309_p1, %p3308_p3 }
  0x2d   : > { %p3311_p13 = pnand %p3310_p12, %p3304_p10 }
  0x2f   : > { %3314 = shalt.err (!%p3311_p13)
}
  0x30   : > { %s4350_s7 = smov 768   ;;  %s4351_s10 = smov 384  }
  0x31   : > { %s4352_s12 = smov 24   ;;  %s3635_s13 = sadd.s32 4294967295, %s3493_s20  }
  0x32   : > { %3108 = dma.hbm_to_vmem [thread:$0]  (!%p3595_p7), %s3593_s5, 3072, %s3599_s8, %s3601_s9, %s4350_s7, %s4351_s10, %s4352_s12  }
  0x33   : > { %s2138_s14 = sadd.s32 4294967294, %s3493_s20   ;;  %p87_p1 = scmp.ne.s32.totalorder %s3477_s16, %s3473_s15 }
  0x34   : > { %p4354_p3 = scmp.eq.s32.totalorder %s3635_s13, 0  ;;  %p173_p11 = scmp.eq.s32.totalorder %s3635_s13, 1 }
  0x35   : > { %p179_p0 = scmp.eq.s32.totalorder %s2138_s14, 1  ;;  %p2139_p4 = scmp.ge.s32.totalorder %s3493_s20, 1 }
  0x36   : > { %p3644_p2 = por %p4354_p3, %p87_p1  ;;  %p4372_p5 = scmp.ne.s32.totalorder %s3481_s17, %s3477_s16 }
  0x37   : > { %p3656_p8 = por %p179_p0, %p87_p1  ;;  %p186_p10 = scmp.lt.s32.totalorder %s3493_s20, 3 }
  0x38   : > { %s4371_s22 = scalar_select %p3644_p2, 1, 0 }
  0x39   : > { %p3652_p6 = por %p173_p11, %p4372_p5  ;;  %s3086_s23 = smul.u32 384, %s3581_s25 }
  0x3a   : > { %s4374_s8 = scalar_select %p3656_p8, 1, 0 }
  0x3b   : > { %s4373_s5 = scalar_select %p3652_p6, 1, 0 }
  0x3c   : > { %p3662_p12 = pnand %p2139_p4, %p186_p10  ;;  %s3499_s28 = smov [#allocation3]  }
  0x3d   : > { %s199_s29 = sshll.u32 %s3499_s28, 4  ;;  %s4376_s2 = sld [smem:[#allocation20_spill]]  ;;  %s3666_s29 = int_to_ptr.vmem [resolvable:$true] %s199_s29 }
  0x3e   : > { %s4375_s24 = scalar_select %p3662_p12, 1, 0 }
  0x3f   : > { %p3101_p13 = pneg %p3662_p12  ;;  %s242_s10 = scalar_lea.vmem [#allocation8], %s3086_s23 }
  0x40   : > { %s249_s12 = sshll.u32 %s242_s10, 4  ;;  %s3683_s12 = int_to_ptr.vmem [resolvable:$true] %s249_s12 }
  0x41   : > { %p3679_p1 = pnand %p3101_p13, %p4354_p3 }
  0x43   : > { %s3675_s7 = scalar_lea.hbm %s4376_s2, %s2217_s26  ;;  %s3320_s14 = scalar_lea.hbm %s4376_s2, 12288 }
  0x44   : > { %s4377_s1 = scalar_select %p3679_p1, 1, 0 }
  0x45   : > { %s3315_s28 = scalar_lea.hbm %s3675_s7, 6144  ;;  %p3321_p5 = scmp.lt.u32.totalorder %s3675_s7, %s4376_s2 }
  0x46   : > { %p3316_p11 = scmp.ne.s32.totalorder %s3675_s7, %s3315_s28  ;;  %p3322_p10 = scmp.lt.u32.totalorder %s3320_s14, %s3315_s28 }
  0x47   : > { %p3324_p3 = scmp.lt.u32.totalorder %s3315_s28, %s3675_s7 }
  0x48   : > { %p3318_p0 = pnand %p3316_p11, %p3607_p9  ;;  %p3323_p13 = por %p3322_p10, %p3321_p5 }
  0x4a   : > { %p3319_p4 = pneg %p3318_p0  ;;  %p3325_p8 = por %p3324_p3, %p3323_p13 }
  0x4c   : > { %p3326_p6 = pnand %p3325_p8, %p3319_p4 }
  0x4e   : > { %3329 = shalt.err (!%p3326_p6)
}
  0x4f   : > { %s3330_s10 = scalar_lea.vmem %s3683_s12, 6144  ;;  %s3500_s23 = smov [#allocation8]  }
  0x50   : > { %p3331_p11 = scmp.ne.s32.totalorder %s3683_s12, %s3330_s10  ;;  %s3335_s26 = sshll.u32 %s3500_s23, 4  ;;  %s3336_s26 = int_to_ptr.vmem [resolvable:$false] %s3335_s26 }
  0x51   : > { %s3337_s21 = scalar_lea.vmem %s3336_s26, 12288  ;;  %p3338_p12 = scmp.lt.s32.totalorder %s3683_s12, %s3336_s26 }
  0x52   : > { %p3333_p0 = pnand %p3331_p11, %p3607_p9  ;;  %p3339_p1 = scmp.lt.s32.totalorder %s3337_s21, %s3330_s10 }
  0x54   : > { %p3334_p2 = pneg %p3333_p0  ;;  %p3340_p5 = por %p3339_p1, %p3338_p12 }
  0x56   : > { %p3341_p10 = pnand %p3340_p5, %p3334_p2 }
  0x58   : > { %3344 = shalt.err (!%p3341_p10)
}
  0x59   : > { %s4378_s27 = smov 24   ;;  %s4379_s28 = smov 384  }
  0x5a   : > { %s4380_s30 = smov 768   ;;  %s3345_s23 = scalar_lea.hbm %s4344_s0, 128 }
  0x5b   : > { %3111 = dma.hbm_to_vmem [thread:$0]  (!%p3595_p7), %s3675_s7, 6144, %s3683_s12, %s3601_s9, %s4380_s30, %s4379_s28, %s4378_s27  }
  0x5c   : > { %p3346_p3 = scmp.ne.s32.totalorder %s4344_s0, %s3345_s23  ;;  %p4381_p2 = scmp.ne.s32.totalorder %s4377_s1, 0 }
  0x5d   : > { %p3352_p1 = scmp.lt.u32.totalorder %s3345_s23, %s4344_s0 }
  0x5e   : > { %p3347_p6 = pneg %p4381_p2 }
  0x60   : > { %p3348_p8 = pnand %p3347_p6, %p3346_p3 }
  0x62   : > { %p3349_p12 = pneg %p3348_p8 }
  0x64   : > { %p3354_p4 = pnand %p3352_p1, %p3349_p12 }
  0x66   : > { %3357 = shalt.err (!%p3354_p4)
}
  0x67   : > { %s3358_s9 = scalar_lea.vmem %s3666_s29, 128  ;;  %p3366_p5 = scmp.lt.s32.totalorder %s3666_s29, %s3666_s29 }
  0x68   : > { %p3359_p13 = scmp.ne.s32.totalorder %s3666_s29, %s3358_s9  ;;  %p3367_p10 = scmp.lt.s32.totalorder %s3358_s9, %s3358_s9 }
  0x6a   : > { %p3361_p11 = pnand %p3359_p13, %p3347_p6  ;;  %p3368_p7 = por %p3367_p10, %p3366_p5 }
  0x6c   : > { %p3362_p0 = pneg %p3361_p11 }
  0x6e   : > { %p3369_p9 = pnand %p3368_p7, %p3362_p0 }
  0x70   : > { %3372 = shalt.err (!%p3369_p9)
}
  0x71   : > { %3104 = dma.hbm_to_vmem [thread:$0]  (!%p4381_p2), %s4344_s0, 128, %s3666_s29, [#allocation4]  }
  0x72   : > { %s2144_s7 = sshll.u32 %s3489_s19, 4  ;;  %s262_s12 = scalar_lea.vmem [#allocation9], %s3581_s25 }
  0x73   : > { %s269_s27 = sshll.u32 %s262_s12, 4  ;;  %s3736_s14 = scalar_lea.hbm %s4347_s3, %s2144_s7  ;;  %s270_s27 = int_to_ptr.vmem [resolvable:$true] %s269_s27 }
  0x74   : > { %s260_s1 = scalar_lea.sflag [#allocation10], %s3581_s25  ;;  %s3373_s23 = scalar_lea.hbm %s3736_s14, 16 }
  0x75   : > { %p3374_p7 = scmp.ne.s32.totalorder %s3736_s14, %s3373_s23  ;;  %p4382_p9 = scmp.ne.s32.totalorder %s4370_s11, 0 }
  0x76   : > { %s3378_s10 = scalar_lea.hbm %s4347_s3, 32  ;;  %p3379_p2 = scmp.lt.u32.totalorder %s3736_s14, %s4347_s3 }
  0x77   : > { %p3376_p3 = pnand %p3374_p7, %p4382_p9  ;;  %p3380_p8 = scmp.lt.u32.totalorder %s3378_s10, %s3373_s23 }
  0x78   : > { %p3382_p1 = scmp.lt.u32.totalorder %s3373_s23, %s3736_s14 }
  0x79   : > { %p3377_p6 = pneg %p3376_p3  ;;  %p3381_p12 = por %p3380_p8, %p3379_p2 }
  0x7b   : > { %p3383_p4 = por %p3382_p1, %p3381_p12 }
  0x7d   : > { %p3384_p13 = pnand %p3383_p4, %p3377_p6 }
  0x7f   : > { %3387 = shalt.err (!%p3384_p13)
}
  0x80   : > { %s3388_s25 = scalar_lea.vmem %s270_s27, 16  ;;  %s3501_s2 = smov [#allocation9]  }
  0x81   : > { %p3389_p11 = scmp.ne.s32.totalorder %s270_s27, %s3388_s25  ;;  %s3393_s17 = sshll.u32 %s3501_s2, 4  ;;  %s3394_s17 = int_to_ptr.vmem [resolvable:$false] %s3393_s17 }
  0x82   : > { %s3395_s7 = scalar_lea.vmem %s3394_s17, 32  ;;  %p3396_p10 = scmp.lt.s32.totalorder %s270_s27, %s3394_s17 }
  0x83   : > { %p3391_p0 = pnand %p3389_p11, %p4382_p9  ;;  %p3397_p7 = scmp.lt.s32.totalorder %s3395_s7, %s3388_s25 }
  0x85   : > { %p3392_p5 = pneg %p3391_p0  ;;  %p3398_p3 = por %p3397_p7, %p3396_p10 }
  0x87   : > { %p3399_p2 = pnand %p3398_p3, %p3392_p5 }
  0x89   : > { %3402 = shalt.err (!%p3399_p2)
}
  0x8a   : > { %p4383_p8 = scmp.ne.s32.totalorder %s4369_s6, 0  ;;  %p4384_p6 = scmp.ne.s32.totalorder %s4375_s24, 0 }
  0x8b   : > { %p4385_p12 = scmp.eq.s32.totalorder (!%p4384_p6), %s3635_s13, 0 }
  0x8c   : > { %3114 = dma.hbm_to_vmem [thread:$0]  (!%p4383_p8), %s3736_s14, 16, %s270_s27, %s260_s1  }
  0x8d   : > { %278 = sbr.rel (%p4384_p6) target bundleno = 2284 (0x8ec), region = 36 }
  0x94   : > { %3456 = dma.done.wait (%p4385_p12), [#allocation4], 128   ;;  %p4386_p9 = pmov %p4385_p12 }
  0x95   : > { %s284_s11 = sand.u32 1, %s3635_s13   ;;  %s3764_s12 = sand.u32 1, %s3477_s16  }
  0x96   : > { %3458 = vsyncadd (%p4386_p9), [#allocation4], 4294967168  ;;  %s3087_s28 = smul.u32 192, %s3764_s12  ;;  %s285_s6 = scalar_lea.sflag [#allocation7], %s284_s11 }
  0x97   : > { %p4387_p1 = scmp.ne.s32.totalorder %s4371_s22, 0 }
  0x98   : > { %s3767_s30 = scalar_lea.vmem [#allocation6], %s3087_s28 }
  0x99   : > { %3460 = dma.done.wait (%p4387_p1), %s285_s6, 9216  }
  0x9a   : > { %3462 = vsyncadd (%p4387_p1), %s285_s6, 4294958080  ;;  %s3088_s24 = smul.u32 384, %s3764_s12  ;;  %s303_s13 = scalar_lea.sflag [#allocation10], %s3764_s12 }
  0x9b   : > { %s305_s14 = scalar_lea.vmem [#allocation9], %s3764_s12 }
  0x9c   : > { %s3774_s27 = scalar_lea.vmem [#allocation8], %s3088_s24 }
  0x9d   : > { %3464 = dma.done.wait (%p4387_p1), %s303_s13, 16  }
  0x9e   : > { %3466 = vsyncadd (%p4387_p1), %s303_s13, 4294967280  ;;  %v3502_v0 = vmov 0.0|0.0   ;;  %v3503_v1 = vmov 0.0   ;;  %vm3504_vm0 = vmmov 0   ;;  %v3505_v2 = vmov 0   ;;  %v358_v3 = vld [vmem:[%s3774_s27 + $0x8] sm:$0xff] }
  0x9f   : > { %2669 = vmatprep.subr.bf16.mxu1 %v3502_v0  ;;  %478 = vmatprep.mubr.f32.mxu0 %v3503_v1  ;;  %v361_v4 = vld [vmem:[%s3774_s27 + $0x20] sm:$0xff]  ;;  %v360_v7 = vld [vmem:[%s3774_s27 + $0x18] sm:$0xff]  ;;  %v367_v9 = vld [vmem:[%s3774_s27 + $0x50] sm:$0xff]  ;;  %s775_s22 = smul.u32 5, %s3485_s18  ;;  %s2147_s10 = sshll.u32 %s3764_s12, 6 }
  0xa0   : > { %2389 = vmatprep.mubr.msk.f32.mxu1 %vm3504_vm0, %v3503_v1  ;;  %3182 = vset.pattern.permute.xlu0 %v3505_v2  ;;  %v357_v5 = vld [vmem:[%s3774_s27] sm:$0xff]  ;;  %v3789_v6 = vpack.c.bf16 %v361_v4, %v358_v3  ;;  %v364_v8 = vld [vmem:[%s3774_s27 + $0x38] sm:$0xff]  ;;  %v363_v12 = vld [vmem:[%s3774_s27 + $0x30] sm:$0xff]  ;;  %s586_s1 = smul.u32 7, %s3485_s18  ;;  %s3974_s9 = scalar_lea.vmem [#allocation11], %s2147_s10 }
  0xa1   : > { %3193 = vset.pattern.permute.xlu1 %v3505_v2  ;;  %v3794_v10 = vpack.c.bf16 %v360_v7, %v357_v5  ;;  %v3796_v11 = vpack.c.bf16 %v367_v9, %v364_v8  ;;  %v366_v13 = vld [vmem:[%s3774_s27 + $0x48] sm:$0xff]  ;;  %v373_v15 = vld [vmem:[%s3774_s27 + $0x80] sm:$0xff]  ;;  %v372_v19 = vld [vmem:[%s3774_s27 + $0x78] sm:$0xff]  ;;  %s776_s23 = sadd.s32 1, %s775_s22  ;;  %s2219_s29 = smul.u32 168, %s3485_s18 }
  0xa2   : > { %v370_v14 = vld [vmem:[%s3774_s27 + $0x68] sm:$0xff]  ;;  %2638 = vmatprep.subr.bf16.mxu0 %v3789_v6  ;;  %v3804_v16 = vpack.c.bf16 %v366_v13, %v363_v12  ;;  %v369_v18 = vld [vmem:[%s3774_s27 + $0x60] sm:$0xff]  ;;  %v376_v20 = vld [vmem:[%s3774_s27 + $0x98] sm:$0xff]  ;;  %v588_v42 = vstv %s586_s1  ;;  %s2154_s21 = smul.u32 56, %s3485_s18  ;;  %s1153_s17 = sadd.s32 3, %s3485_s18 }
  0xa3   : > { %2640 = vmatpush1.bf16.msra.mxu0 %v3794_v10  ;;  %v3807_v17 = vpack.c.bf16 %v373_v15, %v370_v14  ;;  %v379_v21 = vld [vmem:[%s3774_s27 + $0xb0] sm:$0xff]  ;;  %v3815_v22 = vpack.c.bf16 %v372_v19, %v369_v18  ;;  %v378_v25 = vld [vmem:[%s3774_s27 + $0xa8] sm:$0xff]  ;;  %v385_v29 = vld [vmem:[%s3774_s27 + $0xe0] sm:$0xff]  ;;  %v777_v43 = vstv %s776_s23  ;;  %s410_s26 = scalar_lea.vmem %s3767_s30, %s2219_s29 [#allocation6]  ;;  %s964_s2 = smul.u32 3, %s3485_s18 }
  0xa4   : > { %2642 = vmatprep.subr.bf16.mxu0 %v3796_v11  ;;  %v375_v23 = vld [vmem:[%s3774_s27 + $0x90] sm:$0xff]  ;;  %v3819_v24 = vpack.c.bf16 %v379_v21, %v376_v20  ;;  %v362_v27 = vld [vmem:[%s3774_s27 + $0x28] sm:$0xff]  ;;  %v365_v31 = vld [vmem:[%s3774_s27 + $0x40] sm:$0xff]  ;;  %s599_s25 = scalar_lea.vmem %s3974_s9, %s2154_s21 [#allocation11]  ;;  %s2155_s11 = smul.u32 120, %s3485_s18 }
  0xa5   : > { %v359_v26 = vld [vmem:[%s3774_s27 + $0x10] sm:$0xff]  ;;  %v382_v28 = vld [vmem:[%s3774_s27 + $0xc8] sm:$0xff]  ;;  %v368_v32 = vld [vmem:[%s3774_s27 + $0x58] sm:$0xff]  ;;  %v3832_v33 = vpack.c.bf16 %v378_v25, %v375_v23  ;;  %s965_s7 = sadd.s32 2, %s964_s2  ;;  %s2162_s6 = smul.u32 40, %s3485_s18 }
  0xa6   : > { %v3826_v30 = vpack.c.bf16 %v362_v27, %v359_v26  ;;  %v381_v34 = vld [vmem:[%s3774_s27 + $0xc0] sm:$0xff]  ;;  %v3836_v35 = vpack.c.bf16 %v368_v32, %v365_v31  ;;  %v3839_v36 = vpack.c.bf16 %v385_v29, %v382_v28  ;;  %v384_v37 = vld [vmem:[%s3774_s27 + $0xd8] sm:$0xff]  ;;  %v371_v38 = vld [vmem:[%s3774_s27 + $0x70] sm:$0xff]  ;;  %s2019_s28 = scalar_lea.vmem %s3767_s30, %s2155_s11 [#allocation6]  ;;  %s2171_s22 = smul.u32 24, %s3485_s18 }
  0xa7   : > { %2644 = vmatpush1.bf16.msra.mxu0 %v3804_v16  ;;  %v374_v39 = vld [vmem:[%s3774_s27 + $0x88] sm:$0xff]  ;;  %v388_v40 = vld [vmem:[%s3774_s27 + $0xf8] sm:$0xff]  ;;  %v391_v41 = vld [vmem:[%s3774_s27 + $0x110] sm:$0xff]  ;;  %v3848_v44 = vpack.c.bf16 %v384_v37, %v381_v34  ;;  %s2023_s24 = scalar_lea.vmem %s3974_s9, %s2162_s6 [#allocation11]  ;;  %s1340_s23 = smul.u32 4294967295, %s3485_s18 }
  0xa8   : > { %2646 = vmatprep.subr.bf16.mxu0 %v3807_v17  ;;  %2671 = vmatpush3.bf16.msra.mxu1 %v3826_v30  ;;  %v387_v45 = vld [vmem:[%s3774_s27 + $0xf0] sm:$0xff]  ;;  %v3852_v46 = vpack.c.bf16 %v374_v39, %v371_v38  ;;  %v3854_v47 = vld [vmem:[#allocation3] sm:$0xff]  ;;  %v3857_v48 = vpack.c.bf16 %v391_v41, %v388_v40  ;;  %v390_v49 = vld [vmem:[%s3774_s27 + $0x108] sm:$0xff]  ;;  %s2031_s1 = scalar_lea.vmem %s3974_s9, %s2171_s22 [#allocation11]  ;;  %s1529_s29 = smul.u32 4294967293, %s3485_s18 }
  0xa9   : > { %2672 = vmatprep.subr.bf16.mxu1 %v3502_v0  ;;  %v377_v50 = vld [vmem:[%s3774_s27 + $0xa0] sm:$0xff]  ;;  %v380_v51 = vld [vmem:[%s3774_s27 + $0xb8] sm:$0xff]  ;;  %vm589_vm1 = vcmp.lt.s32.totalorder %v588_v42, %v3854_v47  ;;  %vm778_vm2 = vcmp.lt.s32.totalorder %v777_v43, %v3854_v47  ;;  %v394_v52 = vld [vmem:[%s3774_s27 + $0x128] sm:$0xff]  ;;  %v3870_v57 = vpack.c.bf16 %v390_v49, %v387_v45  ;;  %s2034_s21 = scalar_lea.vmem %s3767_s30, %s2171_s22 [#allocation6]  ;;  %p4388_p13 = scmp.ne.s32.totalorder %s4373_s5, 0 }
  0xaa   : > { %v397_v53 = vld [vmem:[%s3774_s27 + $0x140] sm:$0xff]  ;;  %v2153_v54 = vsel %vm589_vm1, 1.0, %v3503_v1  ;;  %v2161_v55 = vsel %vm778_vm2, 1.0, %v3503_v1  ;;  %v3874_v59 = vpack.c.bf16 %v380_v51, %v377_v50  ;;  %v396_v61 = vld [vmem:[%s3774_s27 + $0x138] sm:$0xff]  ;;  %v383_v62 = vld [vmem:[%s3774_s27 + $0xd0] sm:$0xff]  ;;  %s1530_s10 = sadd.s32 5, %s1529_s29 }
  0xab   : > { %2648 = vmatpush1.bf16.msra.mxu0 %v3815_v22  ;;  %v3183_v56 = vpack.i.bf16 %v2161_v55, %v2153_v54  ;;  %v393_v58 = vld [vmem:[%s3774_s27 + $0x120] sm:$0xff]  ;;  %v3877_v60 = vpack.c.bf16 %v397_v53, %v394_v52  ;;  %v386_v63 = vld [vmem:[%s3774_s27 + $0xe8] sm:$0xff]  ;;  %v400_v2 = vld [vmem:[%s3774_s27 + $0x158] sm:$0xff]  ;;  %s2193_s29 = smul.u32 4294967272, %s3485_s18 }
  0xac   : > { %2650 = vmatprep.subr.bf16.mxu0 %v3819_v24  ;;  %2674 = vmatpush3.bf16.msra.mxu1 %v3836_v35  ;;  %v403_v3 = vld [vmem:[%s3774_s27 + $0x170] sm:$0xff]  ;;  %v3886_v4 = vpack.c.bf16 %v396_v61, %v393_v58  ;;  %v3890_v7 = vpack.c.bf16 %v386_v63, %v383_v62  ;;  %v402_v9 = vld [vmem:[%s3774_s27 + $0x168] sm:$0xff]  ;;  %v389_v12 = vld [vmem:[%s3774_s27 + $0x100] sm:$0xff] }
  0xad   : > { %2675 = vmatprep.subr.bf16.mxu1 %v3502_v0  ;;  %3184 = vperm.xlu0 %3182, %v3183_v56   ;;  %v399_v5 = vld [vmem:[%s3774_s27 + $0x150] sm:$0xff]  ;;  %v3893_v8 = vpack.c.bf16 %v403_v3, %v400_v2  ;;  %v392_v13 = vld [vmem:[%s3774_s27 + $0x118] sm:$0xff]  ;;  %v398_v19 = vld [vmem:[%s3774_s27 + $0x148] sm:$0xff] }
  0xae   : > { %v3900_v14 = vpack.c.bf16 %v402_v9, %v399_v5  ;;  %v3903_v15 = vpack.c.bf16 %v392_v13, %v389_v12  ;;  %v395_v18 = vld [vmem:[%s3774_s27 + $0x130] sm:$0xff]  ;;  %v401_v21 = vld [vmem:[%s3774_s27 + $0x160] sm:$0xff]  ;;  %v404_v23 = vld [vmem:[%s3774_s27 + $0x178] sm:$0xff]  ;;  %v1154_v5 = vstv %s1153_s17  ;;  %s2164_s27 = smul.u32 72, %s3485_s18  ;;  %s1167_s17 = ssub.s32 4, %s3485_s18 }
  0xaf   : > { %2652 = vmatpush1.bf16.msra.mxu0 %v3832_v33  ;;  %v3911_v20 = vpack.c.bf16 %v398_v19, %v395_v18  ;;  %v3919_v25 = vpack.c.bf16 %v404_v23, %v401_v21  ;;  %v411_v26 = vld [vmem:[%s410_s26] sm:$0xff]  ;;  %v412_v29 = vld [vmem:[%s410_s26 + $0x8] sm:$0xff]  ;;  %v413_v51 = vld [vmem:[%s410_s26 + $0x10] sm:$0xff]  ;;  %vm1155_vm3 = vcmp.lt.s32.totalorder %v1154_v5, %v3854_v47  ;;  %v966_v9 = vstv %s965_s7  ;;  %s1341_s26 = sadd.s32 4, %s1340_s23  ;;  %s2220_s7 = smul.u32 24, %s1167_s17 }
  0xb0   : > { %2654 = vmatprep.subr.bf16.mxu0 %v3839_v36  ;;  %2677 = vmatpush3.bf16.msra.mxu1 %v3852_v46  ;;  %v3964_v43 = vld [vmem:[%s305_s14] ss:$0 sm:$0xff]  ;;  %v2178_v12 = vsel %vm1155_vm3, 1.0, %v3503_v1  ;;  %vm967_vm4 = vcmp.lt.s32.totalorder %v966_v9, %v3854_v47  ;;  %v2156_v19 = vld [vmem:[%s2019_s28 + $0x18] sm:$0xff]  ;;  %s2027_s13 = scalar_lea.vmem %s3767_s30, %s2164_s27 [#allocation6]  ;;  %s1907_s27 = smul.u32 4294967289, %s3485_s18 }
  0xb1   : > { %2678 = vmatprep.subr.bf16.mxu1 %v3502_v0  ;;  %v2170_v13 = vsel %vm967_vm4, 1.0, %v3503_v1  ;;  %v2166_v5 = vld [vmem:[%s2027_s13 + $0x38] sm:$0xff]  ;;  %s1170_s11 = scalar_lea.vmem %s3767_s30, %s2220_s7 [#allocation6] }
  0xb2   : > { %v3188_v18 = vpack.i.bf16 %v2178_v12, %v2170_v13  ;;  %s1908_s22 = sadd.s32 7, %s1907_s27 }
  0xb3   : > { %2656 = vmatpush1.bf16.msra.mxu0 %v3848_v44 }
  0xb4   : > { %2658 = vmatprep.subr.bf16.mxu0 %v3857_v48  ;;  %2680 = vmatpush3.bf16.msra.mxu1 %v3874_v59 }
  0xb5   : > { %2681 = vmatprep.subr.bf16.mxu1 %v3502_v0  ;;  %3189 = vperm.xlu0 %3182, %v3188_v18  }
  0xb7   : > { %2660 = vmatpush1.bf16.msra.mxu0 %v3870_v57 }
  0xb8   : > { %2662 = vmatprep.subr.bf16.mxu0 %v3877_v60  ;;  %2683 = vmatpush3.bf16.msra.mxu1 %v3890_v7 }
  0xb9   : > { %2684 = vmatprep.subr.bf16.mxu1 %v3502_v0 }
  0xbb   : > { %2664 = vmatpush1.bf16.msra.mxu0 %v3886_v4 }
  0xbc   : > { %2666 = vmatprep.subr.bf16.mxu0 %v3893_v8  ;;  %2686 = vmatpush3.bf16.msra.mxu1 %v3903_v15 }
  0xbd   : > { %2687 = vmatprep.subr.bf16.mxu1 %v3502_v0 }
  0xbf   : > { %2668 = vmatpush1.bf16.msra.mxu0 %v3900_v14 }
  0xc0   : > { %2694 = vmatprep.subr.bf16.mxu0 %v3789_v6  ;;  %2689 = vmatpush3.bf16.msra.mxu1 %v3911_v20 }
  0xc1   : > { %2690 = vmatprep.subr.bf16.mxu1 %v3502_v0 }
  0xc2   : > { %479 = vmatmul.mubr.f32.vlgmr.msra.gmra.mrb[0].mxu0 %v3503_v1 }
  0xc3   : > { %2696 = vmatpush1.bf16.msra.mxu0 %v3794_v10  ;;  %673 = vmatprep.mubr.f32.mxu0 %v3503_v1 }
  0xc4   : > { %2698 = vmatprep.subr.bf16.mxu0 %v3796_v11  ;;  %2692 = vmatpush3.bf16.msra.mxu1 %v3919_v25 }
  0xc5   : > { %2725 = vmatprep.subr.bf16.mxu1 %v3502_v0 }
  0xc7   : > { %2700 = vmatpush1.bf16.msra.mxu0 %v3804_v16  ;;  %2390 = vmatmul.mubr.f32.vlgmr.msra.gmra.mrb[0].mxu1 %v3503_v1 }
  0xc8   : > { %2702 = vmatprep.subr.bf16.mxu0 %v3807_v17  ;;  %2727 = vmatpush3.bf16.msra.mxu1 %v3826_v30 }
  0xc9   : > { %2728 = vmatprep.subr.bf16.mxu1 %v3502_v0  ;;  %2424 = vmatprep.mubr.msk.f32.mxu1 %vm3504_vm0, %v3503_v1 }
  0xcb   : > { %2704 = vmatpush1.bf16.msra.mxu0 %v3815_v22 }
  0xcc   : > { %2706 = vmatprep.subr.bf16.mxu0 %v3819_v24  ;;  %2730 = vmatpush3.bf16.msra.mxu1 %v3836_v35 }
  0xcd   : > { %2731 = vmatprep.subr.bf16.mxu1 %v3502_v0 }
  0xcf   : > { %2708 = vmatpush1.bf16.msra.mxu0 %v3832_v33 }
  0xd0   : > { %2710 = vmatprep.subr.bf16.mxu0 %v3839_v36  ;;  %2733 = vmatpush3.bf16.msra.mxu1 %v3852_v46 }
  0xd1   : > { %2734 = vmatprep.subr.bf16.mxu1 %v3502_v0 }
  0xd3   : > { %2712 = vmatpush1.bf16.msra.mxu0 %v3848_v44 }
  0xd4   : > { %2714 = vmatprep.subr.bf16.mxu0 %v3857_v48  ;;  %2736 = vmatpush3.bf16.msra.mxu1 %v3874_v59 }
  0xd5   : > { %2737 = vmatprep.subr.bf16.mxu1 %v3502_v0 }
  0xd7   : > { %2716 = vmatpush1.bf16.msra.mxu0 %v3870_v57 }
  0xd8   : > { %2718 = vmatprep.subr.bf16.mxu0 %v3877_v60  ;;  %2739 = vmatpush3.bf16.msra.mxu1 %v3890_v7 }
  0xd9   : > { %2740 = vmatprep.subr.bf16.mxu1 %v3502_v0 }
  0xdb   : > { %2720 = vmatpush1.bf16.msra.mxu0 %v3886_v4 }
  0xdc   : > { %2722 = vmatprep.subr.bf16.mxu0 %v3893_v8  ;;  %2742 = vmatpush3.bf16.msra.mxu1 %v3903_v15 }
  0xdd   : > { %2743 = vmatprep.subr.bf16.mxu1 %v3502_v0 }
  0xdf   : > { %2724 = vmatpush1.bf16.msra.mxu0 %v3900_v14 }
  0xe0   : > { %2750 = vmatprep.subr.bf16.mxu0 %v3789_v6  ;;  %2745 = vmatpush3.bf16.msra.mxu1 %v3911_v20 }
  0xe1   : > { %2746 = vmatprep.subr.bf16.mxu1 %v3502_v0 }
  0xe4   : > { %2748 = vmatpush3.bf16.msra.mxu1 %v3919_v25 }
  0xe5   : > { %2781 = vmatprep.subr.bf16.mxu1 %v3502_v0 }
 0x12c   : > { %v3968_v55 = vpop.permute.xlu0 %3184 }
 0x12d   : > { %v3186_v63 = vunpack.i.l.bf16 %v3968_v55 }
 0x195   : > { %v480_v27 = vpop.f32.mrb[0].mxu0 }
 0x196   : > { %v555_v28 = vadd.f32 %v480_v27, %v411_v26  ;;  %v482_v31 = vpop.f32.mrb[1].mxu0  ;;  %v2157_v27 = vld [vmem:[%s2019_s28 + $0x20] sm:$0xff] }
 0x197   : > { %v562_v34 = vadd.f32 %v482_v31, %v412_v29 }
 0x198   : > { %v2150_v32 = vmul.f32 -1.442695, %v555_v28 }
 0x199   : > { %v2151_v37 = vmul.f32 -1.442695, %v562_v34 }
 0x19a   : > { %3204 = vpow2.f32 %v2150_v32  ;;  %v551_v38 = vpop.f32.mrb[0].mxu1 }
 0x19b   : > { %v2391_v39 = vpop.f32.mrb[1].mxu1  ;;  %3206 = vpow2.f32 %v2151_v37  ;;  %v575_v49 = vadd.f32 %v3964_v43, %v551_v38 }
 0x1a4   : > { %v3205_v40 = vpop.eup %3204 }
 0x1a5   : > { %v559_v41 = vadd.f32 1.0, %v3205_v40  ;;  %v3207_v42 = vpop.eup %3206 }
 0x1a6   : > { %v566_v45 = vadd.f32 1.0, %v3207_v42 }
 0x1a7   : > { %3208 = vrcp.f32 %v559_v41 }
 0x1a8   : > { %3210 = vrcp.f32 %v566_v45  ;;  %v2158_v45 = vld [vmem:[%s2019_s28 + $0x28] sm:$0xff]  ;;  %s2185_s28 = sshll.u32 %s1167_s17, 3  ;;  %s2204_s17 = smul.u32 4294967128, %s3485_s18 }
 0x1a9   : > { %s1353_s6 = scalar_lea.vmem %s3974_s9, %s2185_s28 [#allocation11]  ;;  %s2214_s28 = sshll.u32 %s3485_s18, 7 }
 0x1aa   : > { %s2061_s7 = scalar_lea.vmem %s3767_s30, %s2204_s17 [#allocation6]  ;;  %s4295_s27 = scalar_lea.hbm %s4348_s4, %s2214_s28 }
 0x1b1   : > { %v3209_v50 = vpop.eup %3208 }
 0x1b2   : > { %v576_v52 = vmul.f32 %v3209_v50, %v575_v49  ;;  %v3211_v54 = vpop.eup %3210 }
 0x1b3   : > { %v579_v56 = vsub.f32 1.0, %v3211_v54  ;;  %v581_v62 = vmul.f32 0.0, %v3211_v54  ;;  %v3187_v54 = vunpack.i.h.bf16 %v3968_v55  ;;  %v2165_v55 = vld [vmem:[%s2027_s13 + $0x30] sm:$0xff] }
 0x1b4   : > { %v577_v53 = vadd.f32 %v576_v52, %v413_v51 }
 0x1b6   : > { %3212 = vtanh.f32 %v577_v53 }
 0x1c0   : > { %v3213_v58 = vpop.eup %3212 }
 0x1c1   : > { %v580_v61 = vmul.f32 %v3213_v58, %v579_v56 }
 0x1c3   : > { %v3972_v2 = vadd.f32 %v581_v62, %v580_v61 }
 0x1c5   : > { %v597_v3 = vmul.f32 %v3186_v63, %v3972_v2  ;;  %674 = vmatmul.mubr.f32.vlgmr.msra.gmra.mrb[2].mxu0 %v3972_v2  ;;  %2425 = vmatmul.mubr.f32.vlgmr.msra.gmra.mrb[2].mxu1 %v3972_v2 }
 0x1c6   : > { %2752 = vmatpush1.bf16.msra.mxu0 %v3794_v10  ;;  %2783 = vmatpush3.bf16.msra.mxu1 %v3826_v30 }
 0x1c7   : > { %600 = vst [vmem:[%s599_s25] sm:$0xff] %v597_v3  ;;  %2754 = vmatprep.subr.bf16.mxu0 %v3796_v11  ;;  %2784 = vmatprep.subr.bf16.mxu1 %v3502_v0  ;;  %s2179_s25 = sshll.u32 %s3485_s18, 3 }
 0x1c8   : > { %862 = vmatprep.mubr.f32.mxu0 %v3503_v1  ;;  %2459 = vmatprep.mubr.msk.f32.mxu1 %vm3504_vm0, %v3503_v1  ;;  %s2037_s2 = scalar_lea.vmem %s3974_s9, %s2179_s25 [#allocation11]  ;;  %s2202_s25 = smul.u32 4294967256, %s3485_s18 }
 0x1ca   : > { %2756 = vmatpush1.bf16.msra.mxu0 %v3804_v16  ;;  %2786 = vmatpush3.bf16.msra.mxu1 %v3836_v35 }
 0x1cb   : > { %2758 = vmatprep.subr.bf16.mxu0 %v3807_v17  ;;  %2787 = vmatprep.subr.bf16.mxu1 %v3502_v0 }
 0x1ce   : > { %2760 = vmatpush1.bf16.msra.mxu0 %v3815_v22  ;;  %2789 = vmatpush3.bf16.msra.mxu1 %v3852_v46 }
 0x1cf   : > { %2762 = vmatprep.subr.bf16.mxu0 %v3819_v24  ;;  %2790 = vmatprep.subr.bf16.mxu1 %v3502_v0 }
 0x1d2   : > { %2764 = vmatpush1.bf16.msra.mxu0 %v3832_v33  ;;  %2792 = vmatpush3.bf16.msra.mxu1 %v3874_v59 }
 0x1d3   : > { %2766 = vmatprep.subr.bf16.mxu0 %v3839_v36  ;;  %2793 = vmatprep.subr.bf16.mxu1 %v3502_v0 }
 0x1d6   : > { %2768 = vmatpush1.bf16.msra.mxu0 %v3848_v44  ;;  %2795 = vmatpush3.bf16.msra.mxu1 %v3890_v7 }
 0x1d7   : > { %2770 = vmatprep.subr.bf16.mxu0 %v3857_v48  ;;  %2796 = vmatprep.subr.bf16.mxu1 %v3502_v0 }
 0x1da   : > { %2772 = vmatpush1.bf16.msra.mxu0 %v3870_v57  ;;  %2798 = vmatpush3.bf16.msra.mxu1 %v3903_v15 }
 0x1db   : > { %2774 = vmatprep.subr.bf16.mxu0 %v3877_v60  ;;  %2799 = vmatprep.subr.bf16.mxu1 %v3502_v0 }
 0x1de   : > { %2776 = vmatpush1.bf16.msra.mxu0 %v3886_v4  ;;  %2801 = vmatpush3.bf16.msra.mxu1 %v3911_v20 }
 0x1df   : > { %2778 = vmatprep.subr.bf16.mxu0 %v3893_v8  ;;  %2802 = vmatprep.subr.bf16.mxu1 %v3502_v0 }
 0x1e2   : > { %2780 = vmatpush1.bf16.msra.mxu0 %v3900_v14  ;;  %2804 = vmatpush3.bf16.msra.mxu1 %v3919_v25 }
 0x1e3   : > { %2806 = vmatprep.subr.bf16.mxu0 %v3789_v6  ;;  %2837 = vmatprep.subr.bf16.mxu1 %v3502_v0 }
 0x298   : > { %v675_v21 = vpop.f32.mrb[2].mxu0  ;;  %v746_v23 = vpop.f32.mrb[2].mxu1 }
 0x299   : > { %v750_v26 = vadd.f32 %v2156_v19, %v675_v21  ;;  %v677_v28 = vpop.f32.mrb[3].mxu0  ;;  %v2426_v29 = vpop.f32.mrb[3].mxu1  ;;  %v764_v41 = vadd.f32 %v3964_v43, %v746_v23 }
 0x29a   : > { %v757_v32 = vadd.f32 %v2157_v27, %v677_v28 }
 0x29b   : > { %v2159_v31 = vmul.f32 -1.442695, %v750_v26 }
 0x29c   : > { %v2160_v34 = vmul.f32 -1.442695, %v757_v32 }
 0x29d   : > { %3214 = vpow2.f32 %v2159_v31  ;;  %v2167_v31 = vld [vmem:[%s2027_s13 + $0x40] sm:$0xff] }
 0x29e   : > { %3216 = vpow2.f32 %v2160_v34 }
 0x2a7   : > { %v3215_v37 = vpop.eup %3214 }
 0x2a8   : > { %v754_v38 = vadd.f32 1.0, %v3215_v37  ;;  %v3217_v39 = vpop.eup %3216 }
 0x2a9   : > { %v761_v40 = vadd.f32 1.0, %v3217_v39 }
 0x2aa   : > { %3218 = vrcp.f32 %v754_v38  ;;  %v4071_v38 = vpop.permute.xlu0 %3189 }
 0x2ab   : > { %3220 = vrcp.f32 %v761_v40 }
 0x2b4   : > { %v3219_v42 = vpop.eup %3218 }
 0x2b5   : > { %v765_v49 = vmul.f32 %v3219_v42, %v764_v41  ;;  %v3221_v51 = vpop.eup %3220 }
 0x2b6   : > { %v768_v52 = vsub.f32 1.0, %v3221_v51  ;;  %v770_v58 = vmul.f32 %v3221_v51, %v3972_v2  ;;  %v1342_v51 = vstv %s1341_s26  ;;  %s2049_s26 = scalar_lea.vmem %s3974_s9, %s2193_s29 [#allocation11] }
 0x2b7   : > { %v766_v50 = vadd.f32 %v2158_v45, %v765_v49  ;;  %v3191_v45 = vunpack.i.l.bf16 %v4071_v38  ;;  %vm1343_vm5 = vcmp.lt.s32.totalorder %v1342_v51, %v3854_v47  ;;  %v1172_v51 = vld [vmem:[%s1170_s11 + $0x8] sm:$0xff] }
 0x2b9   : > { %3222 = vtanh.f32 %v766_v50 }
 0x2c3   : > { %v3223_v53 = vpop.eup %3222 }
 0x2c4   : > { %v769_v56 = vmul.f32 %v3223_v53, %v768_v52  ;;  %v1531_v52 = vstv %s1530_s10  ;;  %v2184_v53 = vsel %vm1343_vm5, 1.0, %v3503_v1  ;;  %s2195_s10 = smul.u32 4294967176, %s3485_s18 }
 0x2c5   : > { %vm1532_vm6 = vcmp.lt.s32.totalorder %v1531_v52, %v3854_v47 }
 0x2c6   : > { %v4027_v61 = vadd.f32 %v770_v58, %v769_v56  ;;  %v2173_v58 = vld [vmem:[%s2034_s21 + $0x48] sm:$0xff] }
 0x2c8   : > { %v786_v62 = vmul.f32 %v3187_v54, %v4027_v61  ;;  %863 = vmatmul.mubr.f32.vlgmr.msra.gmra.mrb[4].mxu0 %v4027_v61  ;;  %2460 = vmatmul.mubr.f32.vlgmr.msra.gmra.mrb[4].mxu1 %v4027_v61  ;;  %v2192_v54 = vsel %vm1532_vm6, 1.0, %v3503_v1 }
 0x2c9   : > { %2808 = vmatpush1.bf16.msra.mxu0 %v3794_v10  ;;  %2839 = vmatpush3.bf16.msra.mxu1 %v3826_v30  ;;  %v3194_v56 = vpack.i.bf16 %v2192_v54, %v2184_v53 }
 0x2ca   : > { %2163 = vst [vmem:[%s2023_s24 + $0x8] sm:$0xff] %v786_v62  ;;  %2810 = vmatprep.subr.bf16.mxu0 %v3796_v11  ;;  %2840 = vmatprep.subr.bf16.mxu1 %v3502_v0  ;;  %s1718_s24 = smul.u32 4294967291, %s3485_s18 }
 0x2cb   : > { %1050 = vmatprep.mubr.f32.mxu0 %v3503_v1  ;;  %2494 = vmatprep.mubr.msk.f32.mxu1 %vm3504_vm0, %v3503_v1 }
 0x2cc   : > { %3195 = vperm.xlu1 %3193, %v3194_v56   ;;  %s1719_s13 = sadd.s32 6, %s1718_s24 }
 0x2cd   : > { %2812 = vmatpush1.bf16.msra.mxu0 %v3804_v16  ;;  %2842 = vmatpush3.bf16.msra.mxu1 %v3836_v35 }
 0x2ce   : > { %2814 = vmatprep.subr.bf16.mxu0 %v3807_v17  ;;  %2843 = vmatprep.subr.bf16.mxu1 %v3502_v0 }
 0x2d1   : > { %2816 = vmatpush1.bf16.msra.mxu0 %v3815_v22  ;;  %2845 = vmatpush3.bf16.msra.mxu1 %v3852_v46 }
 0x2d2   : > { %2818 = vmatprep.subr.bf16.mxu0 %v3819_v24  ;;  %2846 = vmatprep.subr.bf16.mxu1 %v3502_v0 }
 0x2d5   : > { %2820 = vmatpush1.bf16.msra.mxu0 %v3832_v33  ;;  %2848 = vmatpush3.bf16.msra.mxu1 %v3874_v59 }
 0x2d6   : > { %2822 = vmatprep.subr.bf16.mxu0 %v3839_v36  ;;  %2849 = vmatprep.subr.bf16.mxu1 %v3502_v0 }
 0x2d9   : > { %2824 = vmatpush1.bf16.msra.mxu0 %v3848_v44  ;;  %2851 = vmatpush3.bf16.msra.mxu1 %v3890_v7 }
 0x2da   : > { %2826 = vmatprep.subr.bf16.mxu0 %v3857_v48  ;;  %2852 = vmatprep.subr.bf16.mxu1 %v3502_v0 }
 0x2dd   : > { %2828 = vmatpush1.bf16.msra.mxu0 %v3870_v57  ;;  %2854 = vmatpush3.bf16.msra.mxu1 %v3903_v15 }
 0x2de   : > { %2830 = vmatprep.subr.bf16.mxu0 %v3877_v60  ;;  %2855 = vmatprep.subr.bf16.mxu1 %v3502_v0 }
 0x2e1   : > { %2832 = vmatpush1.bf16.msra.mxu0 %v3886_v4  ;;  %2857 = vmatpush3.bf16.msra.mxu1 %v3911_v20 }
 0x2e2   : > { %2834 = vmatprep.subr.bf16.mxu0 %v3893_v8  ;;  %2858 = vmatprep.subr.bf16.mxu1 %v3502_v0 }
 0x2e5   : > { %2836 = vmatpush1.bf16.msra.mxu0 %v3900_v14  ;;  %2860 = vmatpush3.bf16.msra.mxu1 %v3919_v25 }
 0x2e6   : > { %2862 = vmatprep.subr.bf16.mxu0 %v3789_v6  ;;  %2893 = vmatprep.subr.bf16.mxu1 %v3502_v0 }
 0x39b   : > { %v864_v63 = vpop.f32.mrb[4].mxu0  ;;  %v935_v2 = vpop.f32.mrb[4].mxu1 }
 0x39c   : > { %v939_v3 = vadd.f32 %v2165_v55, %v864_v63  ;;  %v866_v9 = vpop.f32.mrb[5].mxu0  ;;  %v2461_v12 = vpop.f32.mrb[5].mxu1  ;;  %v953_v28 = vadd.f32 %v3964_v43, %v935_v2 }
 0x39d   : > { %v946_v18 = vadd.f32 %v2166_v5, %v866_v9 }
 0x39e   : > { %v2168_v13 = vmul.f32 -1.442695, %v939_v3 }
 0x39f   : > { %v2169_v19 = vmul.f32 -1.442695, %v946_v18 }
 0x3a0   : > { %3224 = vpow2.f32 %v2168_v13 }
 0x3a1   : > { %3226 = vpow2.f32 %v2169_v19 }
 0x3aa   : > { %v3225_v21 = vpop.eup %3224 }
 0x3ab   : > { %v943_v23 = vadd.f32 1.0, %v3225_v21  ;;  %v3227_v26 = vpop.eup %3226 }
 0x3ac   : > { %v950_v27 = vadd.f32 1.0, %v3227_v26 }
 0x3ad   : > { %3228 = vrcp.f32 %v943_v23 }
 0x3ae   : > { %3230 = vrcp.f32 %v950_v27  ;;  %v2175_v27 = vld [vmem:[%s2034_s21 + $0x58] sm:$0xff] }
 0x3b7   : > { %v3229_v29 = vpop.eup %3228 }
 0x3b8   : > { %v954_v32 = vmul.f32 %v3229_v29, %v953_v28  ;;  %v3231_v37 = vpop.eup %3230 }
 0x3b9   : > { %v957_v39 = vsub.f32 1.0, %v3231_v37  ;;  %v959_v42 = vmul.f32 %v3231_v37, %v4027_v61  ;;  %v2174_v61 = vld [vmem:[%s2034_s21 + $0x50] sm:$0xff]  ;;  %v3192_v37 = vunpack.i.h.bf16 %v4071_v38  ;;  %v1171_v38 = vld [vmem:[%s1170_s11] sm:$0xff]  ;;  %s2053_s21 = scalar_lea.vmem %s3767_s30, %s2195_s10 [#allocation6] }
 0x3ba   : > { %v955_v34 = vadd.f32 %v2167_v31, %v954_v32 }
 0x3bc   : > { %3232 = vtanh.f32 %v955_v34 }
 0x3c6   : > { %v3233_v40 = vpop.eup %3232 }
 0x3c7   : > { %v958_v41 = vmul.f32 %v3233_v40, %v957_v39 }
 0x3c9   : > { %v4076_v49 = vadd.f32 %v959_v42, %v958_v41 }
 0x3cb   : > { %v975_v50 = vmul.f32 %v3191_v45, %v4076_v49  ;;  %1051 = vmatmul.mubr.f32.vlgmr.msra.gmra.mrb[6].mxu0 %v4076_v49  ;;  %2495 = vmatmul.mubr.f32.vlgmr.msra.gmra.mrb[6].mxu1 %v4076_v49 }
 0x3cc   : > { %2864 = vmatpush1.bf16.msra.mxu0 %v3794_v10  ;;  %2895 = vmatpush3.bf16.msra.mxu1 %v3826_v30 }
 0x3cd   : > { %2172 = vst [vmem:[%s2031_s1 + $0x10] sm:$0xff] %v975_v50  ;;  %2866 = vmatprep.subr.bf16.mxu0 %v3796_v11  ;;  %2896 = vmatprep.subr.bf16.mxu1 %v3502_v0  ;;  %s2186_s1 = smul.u32 4294967224, %s3485_s18 }
 0x3ce   : > { %1238 = vmatprep.mubr.f32.mxu0 %v3503_v1  ;;  %2529 = vmatprep.mubr.msk.f32.mxu1 %vm3504_vm0, %v3503_v1 }
 0x3cf   : > { %s2045_s23 = scalar_lea.vmem %s3767_s30, %s2186_s1 [#allocation6]  ;;  %s2211_s30 = smul.u32 4294967240, %s3485_s18 }
 0x3d0   : > { %2868 = vmatpush1.bf16.msra.mxu0 %v3804_v16  ;;  %2898 = vmatpush3.bf16.msra.mxu1 %v3836_v35  ;;  %s3506_s18 = smov [#allocation11]  }
 0x3d1   : > { %2870 = vmatprep.subr.bf16.mxu0 %v3807_v17  ;;  %2899 = vmatprep.subr.bf16.mxu1 %v3502_v0  ;;  %s3407_s1 = sshll.u32 %s3506_s18, 4  ;;  %s3408_s1 = int_to_ptr.vmem [resolvable:$false] %s3407_s1 }
 0x3d4   : > { %2872 = vmatpush1.bf16.msra.mxu0 %v3815_v22  ;;  %2901 = vmatpush3.bf16.msra.mxu1 %v3852_v46 }
 0x3d5   : > { %2874 = vmatprep.subr.bf16.mxu0 %v3819_v24  ;;  %2902 = vmatprep.subr.bf16.mxu1 %v3502_v0 }
 0x3d8   : > { %2876 = vmatpush1.bf16.msra.mxu0 %v3832_v33  ;;  %2904 = vmatpush3.bf16.msra.mxu1 %v3874_v59 }
 0x3d9   : > { %2878 = vmatprep.subr.bf16.mxu0 %v3839_v36  ;;  %2905 = vmatprep.subr.bf16.mxu1 %v3502_v0 }
 0x3dc   : > { %2880 = vmatpush1.bf16.msra.mxu0 %v3848_v44  ;;  %2907 = vmatpush3.bf16.msra.mxu1 %v3890_v7 }
 0x3dd   : > { %2882 = vmatprep.subr.bf16.mxu0 %v3857_v48  ;;  %2908 = vmatprep.subr.bf16.mxu1 %v3502_v0 }
 0x3e0   : > { %2884 = vmatpush1.bf16.msra.mxu0 %v3870_v57  ;;  %2910 = vmatpush3.bf16.msra.mxu1 %v3903_v15 }
 0x3e1   : > { %2886 = vmatprep.subr.bf16.mxu0 %v3877_v60  ;;  %2911 = vmatprep.subr.bf16.mxu1 %v3502_v0 }
 0x3e4   : > { %2888 = vmatpush1.bf16.msra.mxu0 %v3886_v4  ;;  %2913 = vmatpush3.bf16.msra.mxu1 %v3911_v20 }
 0x3e5   : > { %2890 = vmatprep.subr.bf16.mxu0 %v3893_v8  ;;  %2914 = vmatprep.subr.bf16.mxu1 %v3502_v0 }
 0x3e8   : > { %2892 = vmatpush1.bf16.msra.mxu0 %v3900_v14  ;;  %2916 = vmatpush3.bf16.msra.mxu1 %v3919_v25 }
 0x3e9   : > { %2918 = vmatprep.subr.bf16.mxu0 %v3789_v6  ;;  %2949 = vmatprep.subr.bf16.mxu1 %v3502_v0 }
 0x49e   : > { %v1052_v62 = vpop.f32.mrb[6].mxu0  ;;  %v1123_v55 = vpop.f32.mrb[6].mxu1 }
 0x49f   : > { %v1127_v63 = vadd.f32 %v2173_v58, %v1052_v62  ;;  %v1054_v2 = vpop.f32.mrb[7].mxu0  ;;  %v2496_v3 = vpop.f32.mrb[7].mxu1  ;;  %v1141_v23 = vadd.f32 %v3964_v43, %v1123_v55 }
 0x4a0   : > { %v1134_v5 = vadd.f32 %v2174_v61, %v1054_v2 }
 0x4a1   : > { %v2176_v9 = vmul.f32 -1.442695, %v1127_v63 }
 0x4a2   : > { %v2177_v12 = vmul.f32 -1.442695, %v1134_v5  ;;  %v1173_v5 = vld [vmem:[%s1170_s11 + $0x10] sm:$0xff]  ;;  %s1943_s11 = sshll.u32 %s3974_s9, 4  ;;  %s4289_s11 = int_to_ptr.vmem [resolvable:$true] %s1943_s11 }
 0x4a3   : > { %3234 = vpow2.f32 %v2176_v9  ;;  %p3410_p5 = scmp.lt.s32.totalorder %s4289_s11, %s3408_s1 }
 0x4a4   : > { %3236 = vpow2.f32 %v2177_v12 }
 0x4ad   : > { %v3235_v13 = vpop.eup %3234 }
 0x4ae   : > { %v1131_v18 = vadd.f32 1.0, %v3235_v13  ;;  %v3237_v19 = vpop.eup %3236 }
 0x4af   : > { %v1138_v21 = vadd.f32 1.0, %v3237_v19 }
 0x4b0   : > { %3238 = vrcp.f32 %v1131_v18  ;;  %v4178_v18 = vpop.permute.xlu1 %3195 }
 0x4b1   : > { %3240 = vrcp.f32 %v1138_v21 }
 0x4ba   : > { %v3239_v26 = vpop.eup %3238 }
 0x4bb   : > { %v1142_v28 = vmul.f32 %v3239_v26, %v1141_v23  ;;  %v3241_v31 = vpop.eup %3240 }
 0x4bc   : > { %v1145_v32 = vsub.f32 1.0, %v3241_v31  ;;  %v1147_v40 = vmul.f32 %v3241_v31, %v4076_v49  ;;  %v1720_v31 = vstv %s1719_s13  ;;  %s1924_s13 = scalar_lea.sflag [#allocation5], %s3764_s12 }
 0x4bd   : > { %v1143_v29 = vadd.f32 %v2175_v27, %v1142_v28  ;;  %v3197_v27 = vunpack.i.l.bf16 %v4178_v18  ;;  %vm1721_vm7 = vcmp.lt.s32.totalorder %v1720_v31, %v3854_v47  ;;  %v2206_v31 = vld [vmem:[%s2061_s7 + $0xb0] sm:$0xff] }
 0x4bf   : > { %3242 = vtanh.f32 %v1143_v29 }
 0x4c9   : > { %v3243_v34 = vpop.eup %3242 }
 0x4ca   : > { %v1146_v39 = vmul.f32 %v3243_v34, %v1145_v32  ;;  %v1909_v32 = vstv %s1908_s22  ;;  %v2201_v34 = vsel %vm1721_vm7, 1.0, %v3503_v1  ;;  %s3403_s22 = scalar_lea.vmem %s4289_s11, 1024 }
 0x4cb   : > { %vm1910_vm8 = vcmp.lt.s32.totalorder %v1909_v32, %v3854_v47  ;;  %p3404_p4 = scmp.ne.s32.totalorder %s4289_s11, %s3403_s22 }
 0x4cc   : > { %v4132_v41 = vadd.f32 %v1147_v40, %v1146_v39 }
 0x4cd   : > { %p3405_p11 = pnand %p3404_p4, %p4388_p13 }
 0x4ce   : > { %v1163_v42 = vmul.f32 %v3192_v37, %v4132_v41  ;;  %1239 = vmatmul.mubr.f32.vlgmr.msra.gmra.mrb[8].mxu0 %v4132_v41  ;;  %2530 = vmatmul.mubr.f32.vlgmr.msra.gmra.mrb[8].mxu1 %v4132_v41  ;;  %v2210_v37 = vsel %vm1910_vm8, 1.0, %v3503_v1 }
 0x4cf   : > { %2920 = vmatpush1.bf16.msra.mxu0 %v3794_v10  ;;  %2951 = vmatpush3.bf16.msra.mxu1 %v3826_v30  ;;  %v3199_v39 = vpack.i.bf16 %v2210_v37, %v2201_v34  ;;  %p3406_p0 = pneg %p3405_p11 }
 0x4d0   : > { %2180 = vst [vmem:[%s2037_s2 + $0x18] sm:$0xff] %v1163_v42  ;;  %2922 = vmatprep.subr.bf16.mxu0 %v3796_v11  ;;  %2952 = vmatprep.subr.bf16.mxu1 %v3502_v0  ;;  %s2057_s2 = scalar_lea.vmem %s3974_s9, %s2202_s25 [#allocation11] }
 0x4d1   : > { %1427 = vmatprep.mubr.f32.mxu0 %v3503_v1  ;;  %2564 = vmatprep.mubr.msk.f32.mxu1 %vm3504_vm0, %v3503_v1 }
 0x4d2   : > { %3200 = vperm.xlu1 %3193, %v3199_v39  }
 0x4d3   : > { %2924 = vmatpush1.bf16.msra.mxu0 %v3804_v16  ;;  %2954 = vmatpush3.bf16.msra.mxu1 %v3836_v35 }
 0x4d4   : > { %2926 = vmatprep.subr.bf16.mxu0 %v3807_v17  ;;  %2955 = vmatprep.subr.bf16.mxu1 %v3502_v0 }
 0x4d7   : > { %2928 = vmatpush1.bf16.msra.mxu0 %v3815_v22  ;;  %2957 = vmatpush3.bf16.msra.mxu1 %v3852_v46 }
 0x4d8   : > { %2930 = vmatprep.subr.bf16.mxu0 %v3819_v24  ;;  %2958 = vmatprep.subr.bf16.mxu1 %v3502_v0 }
 0x4db   : > { %2932 = vmatpush1.bf16.msra.mxu0 %v3832_v33  ;;  %2960 = vmatpush3.bf16.msra.mxu1 %v3874_v59 }
 0x4dc   : > { %2934 = vmatprep.subr.bf16.mxu0 %v3839_v36  ;;  %2961 = vmatprep.subr.bf16.mxu1 %v3502_v0 }
 0x4df   : > { %2936 = vmatpush1.bf16.msra.mxu0 %v3848_v44  ;;  %2963 = vmatpush3.bf16.msra.mxu1 %v3890_v7 }
 0x4e0   : > { %2938 = vmatprep.subr.bf16.mxu0 %v3857_v48  ;;  %2964 = vmatprep.subr.bf16.mxu1 %v3502_v0 }
 0x4e3   : > { %2940 = vmatpush1.bf16.msra.mxu0 %v3870_v57  ;;  %2966 = vmatpush3.bf16.msra.mxu1 %v3903_v15 }
 0x4e4   : > { %2942 = vmatprep.subr.bf16.mxu0 %v3877_v60  ;;  %2967 = vmatprep.subr.bf16.mxu1 %v3502_v0 }
 0x4e7   : > { %2944 = vmatpush1.bf16.msra.mxu0 %v3886_v4  ;;  %2969 = vmatpush3.bf16.msra.mxu1 %v3911_v20 }
 0x4e8   : > { %2946 = vmatprep.subr.bf16.mxu0 %v3893_v8  ;;  %2970 = vmatprep.subr.bf16.mxu1 %v3502_v0 }
 0x4eb   : > { %2948 = vmatpush1.bf16.msra.mxu0 %v3900_v14  ;;  %2972 = vmatpush3.bf16.msra.mxu1 %v3919_v25 }
 0x4ec   : > { %2974 = vmatprep.subr.bf16.mxu0 %v3789_v6  ;;  %3005 = vmatprep.subr.bf16.mxu1 %v3502_v0 }
 0x5a1   : > { %v1240_v45 = vpop.f32.mrb[8].mxu0  ;;  %v1311_v49 = vpop.f32.mrb[8].mxu1 }
 0x5a2   : > { %v1315_v50 = vadd.f32 %v1240_v45, %v1171_v38  ;;  %v1242_v52 = vpop.f32.mrb[9].mxu0  ;;  %v2531_v53 = vpop.f32.mrb[9].mxu1  ;;  %v1329_v2 = vadd.f32 %v3964_v43, %v1311_v49  ;;  %v2188_v38 = vld [vmem:[%s2045_s23 + $0x80] sm:$0xff] }
 0x5a3   : > { %v1322_v56 = vadd.f32 %v1242_v52, %v1172_v51 }
 0x5a4   : > { %v2182_v54 = vmul.f32 -1.442695, %v1315_v50 }
 0x5a5   : > { %v2183_v58 = vmul.f32 -1.442695, %v1322_v56 }
 0x5a6   : > { %3244 = vpow2.f32 %v2182_v54 }
 0x5a7   : > { %3246 = vpow2.f32 %v2183_v58 }
 0x5b0   : > { %v3245_v61 = vpop.eup %3244 }
 0x5b1   : > { %v1319_v62 = vadd.f32 1.0, %v3245_v61  ;;  %v3247_v55 = vpop.eup %3246 }
 0x5b2   : > { %v1326_v63 = vadd.f32 1.0, %v3247_v55 }
 0x5b3   : > { %3248 = vrcp.f32 %v1319_v62  ;;  %v2189_v62 = vld [vmem:[%s2045_s23 + $0x88] sm:$0xff] }
 0x5b4   : > { %3250 = vrcp.f32 %v1326_v63 }
 0x5bd   : > { %v3249_v3 = vpop.eup %3248 }
 0x5be   : > { %v1330_v9 = vmul.f32 %v3249_v3, %v1329_v2  ;;  %v3251_v13 = vpop.eup %3250 }
 0x5bf   : > { %v1333_v19 = vsub.f32 1.0, %v3251_v13  ;;  %v1335_v26 = vmul.f32 %v3251_v13, %v4132_v41 }
 0x5c0   : > { %v1331_v12 = vadd.f32 %v1330_v9, %v1173_v5  ;;  %v3198_v9 = vunpack.i.h.bf16 %v4178_v18 }
 0x5c2   : > { %3252 = vtanh.f32 %v1331_v12 }
 0x5cc   : > { %v3253_v21 = vpop.eup %3252 }
 0x5cd   : > { %v1334_v23 = vmul.f32 %v3253_v21, %v1333_v19 }
 0x5cf   : > { %v4184_v28 = vadd.f32 %v1335_v26, %v1334_v23  ;;  %v2205_v26 = vld [vmem:[%s2061_s7 + $0xa8] sm:$0xff] }
 0x5d1   : > { %v1351_v29 = vmul.f32 %v3197_v27, %v4184_v28  ;;  %1428 = vmatmul.mubr.f32.vlgmr.msra.gmra.mrb[10].mxu0 %v4184_v28  ;;  %2565 = vmatmul.mubr.f32.vlgmr.msra.gmra.mrb[10].mxu1 %v4184_v28 }
 0x5d2   : > { %2976 = vmatpush1.bf16.msra.mxu0 %v3794_v10  ;;  %3007 = vmatpush3.bf16.msra.mxu1 %v3826_v30 }
 0x5d3   : > { %1354 = vst [vmem:[%s1353_s6] sm:$0xff] %v1351_v29  ;;  %2978 = vmatprep.subr.bf16.mxu0 %v3796_v11  ;;  %3008 = vmatprep.subr.bf16.mxu1 %v3502_v0 }
 0x5d4   : > { %1616 = vmatprep.mubr.f32.mxu0 %v3503_v1  ;;  %2599 = vmatprep.mubr.msk.f32.mxu1 %vm3504_vm0, %v3503_v1 }
 0x5d6   : > { %2980 = vmatpush1.bf16.msra.mxu0 %v3804_v16  ;;  %3010 = vmatpush3.bf16.msra.mxu1 %v3836_v35 }
 0x5d7   : > { %2982 = vmatprep.subr.bf16.mxu0 %v3807_v17  ;;  %3011 = vmatprep.subr.bf16.mxu1 %v3502_v0 }
 0x5da   : > { %2984 = vmatpush1.bf16.msra.mxu0 %v3815_v22  ;;  %3013 = vmatpush3.bf16.msra.mxu1 %v3852_v46 }
 0x5db   : > { %2986 = vmatprep.subr.bf16.mxu0 %v3819_v24  ;;  %3014 = vmatprep.subr.bf16.mxu1 %v3502_v0 }
 0x5de   : > { %2988 = vmatpush1.bf16.msra.mxu0 %v3832_v33  ;;  %3016 = vmatpush3.bf16.msra.mxu1 %v3874_v59 }
 0x5df   : > { %2990 = vmatprep.subr.bf16.mxu0 %v3839_v36  ;;  %3017 = vmatprep.subr.bf16.mxu1 %v3502_v0 }
 0x5e2   : > { %2992 = vmatpush1.bf16.msra.mxu0 %v3848_v44  ;;  %3019 = vmatpush3.bf16.msra.mxu1 %v3890_v7 }
 0x5e3   : > { %2994 = vmatprep.subr.bf16.mxu0 %v3857_v48  ;;  %3020 = vmatprep.subr.bf16.mxu1 %v3502_v0 }
 0x5e6   : > { %2996 = vmatpush1.bf16.msra.mxu0 %v3870_v57  ;;  %3022 = vmatpush3.bf16.msra.mxu1 %v3903_v15 }
 0x5e7   : > { %2998 = vmatprep.subr.bf16.mxu0 %v3877_v60  ;;  %3023 = vmatprep.subr.bf16.mxu1 %v3502_v0 }
 0x5ea   : > { %3000 = vmatpush1.bf16.msra.mxu0 %v3886_v4  ;;  %3025 = vmatpush3.bf16.msra.mxu1 %v3911_v20 }
 0x5eb   : > { %3002 = vmatprep.subr.bf16.mxu0 %v3893_v8  ;;  %3026 = vmatprep.subr.bf16.mxu1 %v3502_v0 }
 0x5ee   : > { %3004 = vmatpush1.bf16.msra.mxu0 %v3900_v14  ;;  %3028 = vmatpush3.bf16.msra.mxu1 %v3919_v25 }
 0x5ef   : > { %3030 = vmatprep.subr.bf16.mxu0 %v3789_v6  ;;  %3061 = vmatprep.subr.bf16.mxu1 %v3502_v0  ;;  %v2187_v6 = vld [vmem:[%s2045_s23 + $0x78] sm:$0xff]  ;;  %s3409_s23 = scalar_lea.vmem %s3408_s1, 2048 }
 0x5f0   : > { %p3411_p10 = scmp.lt.s32.totalorder %s3409_s23, %s3403_s22 }
 0x5f2   : > { %p3412_p7 = por %p3411_p10, %p3410_p5 }
 0x5f4   : > { %p3413_p3 = pnand %p3412_p7, %p3406_p0 }
 0x6a4   : > { %v1429_v40 = vpop.f32.mrb[10].mxu0  ;;  %v1500_v41 = vpop.f32.mrb[10].mxu1 }
 0x6a5   : > { %v1504_v42 = vadd.f32 %v2187_v6, %v1429_v40  ;;  %v1431_v45 = vpop.f32.mrb[11].mxu0  ;;  %v2566_v49 = vpop.f32.mrb[11].mxu1  ;;  %v1518_v58 = vadd.f32 %v3964_v43, %v1500_v41 }
 0x6a6   : > { %v1511_v51 = vadd.f32 %v2188_v38, %v1431_v45  ;;  %v3284_v45 = vld [vmem:[%s305_s14] ss:$0 sm:$0xff]  ;;  %s2065_s14 = scalar_lea.vmem %s3974_s9, %s2211_s30 [#allocation11] }
 0x6a7   : > { %v2190_v50 = vmul.f32 -1.442695, %v1504_v42 }
 0x6a8   : > { %v2191_v52 = vmul.f32 -1.442695, %v1511_v51  ;;  %v2207_v51 = vld [vmem:[%s2061_s7 + $0xb8] sm:$0xff] }
 0x6a9   : > { %3254 = vpow2.f32 %v2190_v50 }
 0x6aa   : > { %3256 = vpow2.f32 %v2191_v52 }
 0x6b3   : > { %v3255_v47 = vpop.eup %3254 }
 0x6b4   : > { %v1508_v53 = vadd.f32 1.0, %v3255_v47  ;;  %v3257_v54 = vpop.eup %3256 }
 0x6b5   : > { %v1515_v56 = vadd.f32 1.0, %v3257_v54 }
 0x6b6   : > { %3258 = vrcp.f32 %v1508_v53 }
 0x6b7   : > { %3260 = vrcp.f32 %v1515_v56 }
 0x6c0   : > { %v3259_v61 = vpop.eup %3258 }
 0x6c1   : > { %v1519_v55 = vmul.f32 %v3259_v61, %v1518_v58  ;;  %v3261_v2 = vpop.eup %3260 }
 0x6c2   : > { %v1522_v3 = vsub.f32 1.0, %v3261_v2  ;;  %v1524_v13 = vmul.f32 %v3261_v2, %v4184_v28 }
 0x6c3   : > { %v1520_v63 = vadd.f32 %v2189_v62, %v1519_v55 }
 0x6c5   : > { %3262 = vtanh.f32 %v1520_v63 }
 0x6cf   : > { %v3263_v5 = vpop.eup %3262 }
 0x6d0   : > { %v1523_v12 = vmul.f32 %v3263_v5, %v1522_v3 }
 0x6d2   : > { %v4237_v19 = vadd.f32 %v1524_v13, %v1523_v12 }
 0x6d4   : > { %v1540_v21 = vmul.f32 %v3198_v9, %v4237_v19  ;;  %1617 = vmatmul.mubr.f32.vlgmr.msra.gmra.mrb[12].mxu0 %v4237_v19  ;;  %2600 = vmatmul.mubr.f32.vlgmr.msra.gmra.mrb[12].mxu1 %v4237_v19 }
 0x6d5   : > { %3032 = vmatpush1.bf16.msra.mxu0 %v3794_v10  ;;  %3063 = vmatpush3.bf16.msra.mxu1 %v3826_v30 }
 0x6d6   : > { %2194 = vst [vmem:[%s2049_s26 + $0x28] sm:$0xff] %v1540_v21  ;;  %3034 = vmatprep.subr.bf16.mxu0 %v3796_v11  ;;  %3064 = vmatprep.subr.bf16.mxu1 %v3502_v0 }
 0x6d7   : > { %1805 = vmatprep.mubr.f32.mxu0 %v3503_v1  ;;  %2634 = vmatprep.mubr.msk.f32.mxu1 %vm3504_vm0, %v3503_v1  ;;  %v2196_v1 = vld [vmem:[%s2053_s21 + $0x90] sm:$0xff] }
 0x6d9   : > { %3036 = vmatpush1.bf16.msra.mxu0 %v3804_v16  ;;  %3066 = vmatpush3.bf16.msra.mxu1 %v3836_v35 }
 0x6da   : > { %3038 = vmatprep.subr.bf16.mxu0 %v3807_v17  ;;  %3067 = vmatprep.subr.bf16.mxu1 %v3502_v0  ;;  %v2197_v17 = vld [vmem:[%s2053_s21 + $0x98] sm:$0xff] }
 0x6dd   : > { %3040 = vmatpush1.bf16.msra.mxu0 %v3815_v22  ;;  %3069 = vmatpush3.bf16.msra.mxu1 %v3852_v46 }
 0x6de   : > { %3042 = vmatprep.subr.bf16.mxu0 %v3819_v24  ;;  %3070 = vmatprep.subr.bf16.mxu1 %v3502_v0 }
 0x6e1   : > { %3044 = vmatpush1.bf16.msra.mxu0 %v3832_v33  ;;  %3072 = vmatpush3.bf16.msra.mxu1 %v3874_v59  ;;  %v2198_v59 = vld [vmem:[%s2053_s21 + $0xa0] sm:$0xff] }
 0x6e2   : > { %3046 = vmatprep.subr.bf16.mxu0 %v3839_v36  ;;  %3073 = vmatprep.subr.bf16.mxu1 %v3502_v0 }
 0x6e5   : > { %3048 = vmatpush1.bf16.msra.mxu0 %v3848_v44  ;;  %3075 = vmatpush3.bf16.msra.mxu1 %v3890_v7 }
 0x6e6   : > { %3050 = vmatprep.subr.bf16.mxu0 %v3857_v48  ;;  %3076 = vmatprep.subr.bf16.mxu1 %v3502_v0 }
 0x6e9   : > { %3052 = vmatpush1.bf16.msra.mxu0 %v3870_v57  ;;  %3078 = vmatpush3.bf16.msra.mxu1 %v3903_v15 }
 0x6ea   : > { %3054 = vmatprep.subr.bf16.mxu0 %v3877_v60  ;;  %3079 = vmatprep.subr.bf16.mxu1 %v3502_v0 }
 0x6ed   : > { %3056 = vmatpush1.bf16.msra.mxu0 %v3886_v4  ;;  %3081 = vmatpush3.bf16.msra.mxu1 %v3911_v20 }
 0x6ee   : > { %3058 = vmatprep.subr.bf16.mxu0 %v3893_v8  ;;  %3082 = vmatprep.subr.bf16.mxu1 %v3502_v0  ;;  %v3201_v8 = vpop.permute.xlu1 %3200 }
 0x6ef   : > { %v3202_v18 = vunpack.i.l.bf16 %v3201_v8  ;;  %v3203_v62 = vunpack.i.h.bf16 %v3201_v8 }
 0x6f1   : > { %3060 = vmatpush1.bf16.msra.mxu0 %v3900_v14  ;;  %3084 = vmatpush3.bf16.msra.mxu1 %v3919_v25 }
 0x7a7   : > { %v1618_v10 = vpop.f32.mrb[12].mxu0  ;;  %v1689_v11 = vpop.f32.mrb[12].mxu1 }
 0x7a8   : > { %v1693_v16 = vadd.f32 %v2196_v1, %v1618_v10  ;;  %v1620_v22 = vpop.f32.mrb[13].mxu0  ;;  %v2601_v24 = vpop.f32.mrb[13].mxu1  ;;  %v1707_v48 = vadd.f32 %v3964_v43, %v1689_v11 }
 0x7a9   : > { %v1700_v33 = vadd.f32 %v2197_v17, %v1620_v22 }
 0x7aa   : > { %v2199_v30 = vmul.f32 -1.442695, %v1693_v16 }
 0x7ab   : > { %v2200_v35 = vmul.f32 -1.442695, %v1700_v33 }
 0x7ac   : > { %3264 = vpow2.f32 %v2199_v30 }
 0x7ad   : > { %3266 = vpow2.f32 %v2200_v35 }
 0x7b6   : > { %v3265_v36 = vpop.eup %3264 }
 0x7b7   : > { %v1697_v0 = vadd.f32 1.0, %v3265_v36  ;;  %v3267_v44 = vpop.eup %3266 }
 0x7b8   : > { %v1704_v46 = vadd.f32 1.0, %v3267_v44 }
 0x7b9   : > { %3268 = vrcp.f32 %v1697_v0 }
 0x7ba   : > { %3270 = vrcp.f32 %v1704_v46 }
 0x7c3   : > { %v3269_v57 = vpop.eup %3268 }
 0x7c4   : > { %v1708_v60 = vmul.f32 %v3269_v57, %v1707_v48  ;;  %v3271_v7 = vpop.eup %3270 }
 0x7c5   : > { %v1711_v14 = vsub.f32 1.0, %v3271_v7  ;;  %v1713_v25 = vmul.f32 %v3271_v7, %v4237_v19 }
 0x7c6   : > { %v1709_v4 = vadd.f32 %v2198_v59, %v1708_v60 }
 0x7c8   : > { %3272 = vtanh.f32 %v1709_v4 }
 0x7d2   : > { %v3273_v15 = vpop.eup %3272 }
 0x7d3   : > { %v1712_v20 = vmul.f32 %v3273_v15, %v1711_v14 }
 0x7d5   : > { %v1714_v23 = vadd.f32 %v1713_v25, %v1712_v20 }
 0x7d7   : > { %v1729_v43 = vmul.f32 %v3202_v18, %v1714_v23  ;;  %1806 = vmatmul.mubr.f32.vlgmr.msra.gmra.mrb[14].mxu0 %v1714_v23  ;;  %2635 = vmatmul.mubr.f32.vlgmr.msra.gmra.mrb[14].mxu1 %v1714_v23 }
 0x7d9   : > { %2203 = vst [vmem:[%s2057_s2 + $0x30] sm:$0xff] %v1729_v43 }
 0x8aa   : > { %v1807_v27 = vpop.f32.mrb[14].mxu0  ;;  %v1878_v28 = vpop.f32.mrb[14].mxu1 }
 0x8ab   : > { %v1882_v29 = vadd.f32 %v2205_v26, %v1807_v27  ;;  %v1809_v32 = vpop.f32.mrb[15].mxu0  ;;  %v2636_v34 = vpop.f32.mrb[15].mxu1  ;;  %v1896_v49 = vadd.f32 %v3284_v45, %v1878_v28 }
 0x8ac   : > { %v1889_v39 = vadd.f32 %v2206_v31, %v1809_v32 }
 0x8ad   : > { %v2208_v37 = vmul.f32 -1.442695, %v1882_v29 }
 0x8ae   : > { %v2209_v6 = vmul.f32 -1.442695, %v1889_v39 }
 0x8af   : > { %3274 = vpow2.f32 %v2208_v37 }
 0x8b0   : > { %3276 = vpow2.f32 %v2209_v6 }
 0x8b9   : > { %v3275_v40 = vpop.eup %3274 }
 0x8ba   : > { %v1886_v41 = vadd.f32 1.0, %v3275_v40  ;;  %v3277_v42 = vpop.eup %3276 }
 0x8bb   : > { %v1893_v38 = vadd.f32 1.0, %v3277_v42 }
 0x8bc   : > { %3278 = vrcp.f32 %v1886_v41 }
 0x8bd   : > { %3280 = vrcp.f32 %v1893_v38 }
 0x8c6   : > { %v3279_v50 = vpop.eup %3278 }
 0x8c7   : > { %v1897_v52 = vmul.f32 %v3279_v50, %v1896_v49  ;;  %v3281_v53 = vpop.eup %3280 }
 0x8c8   : > { %v1900_v54 = vsub.f32 1.0, %v3281_v53  ;;  %v1902_v61 = vmul.f32 %v3281_v53, %v1714_v23 }
 0x8c9   : > { %v1898_v47 = vadd.f32 %v2207_v51, %v1897_v52 }
 0x8cb   : > { %3282 = vtanh.f32 %v1898_v47 }
 0x8d5   : > { %v3283_v56 = vpop.eup %3282 }
 0x8d6   : > { %v1901_v58 = vmul.f32 %v3283_v56, %v1900_v54 }
 0x8d8   : > { %v1903_v55 = vadd.f32 %v1902_v61, %v1901_v58 }
 0x8da   : > { %v1918_v63 = vmul.f32 %v3203_v62, %v1903_v55 }
 0x8dc   : > { %2212 = vst [vmem:[%s2065_s14 + $0x38] sm:$0xff] %v1918_v63 }
 0x8dd   : > { %3416 = shalt.err (!%p3413_p3)
}
 0x8de   : > { %s3417_s9 = scalar_lea.hbm %s4295_s27, 1024  ;;  %s3421_s10 = scalar_lea.hbm %s4348_s4, 2048 }
 0x8df   : > { %p3418_p2 = scmp.ne.s32.totalorder %s4295_s27, %s3417_s9  ;;  %p3422_p12 = scmp.lt.u32.totalorder %s4295_s27, %s4348_s4 }
 0x8e0   : > { %p3423_p9 = scmp.lt.u32.totalorder %s3421_s10, %s3417_s9  ;;  %p3425_p4 = scmp.lt.u32.totalorder %s3417_s9, %s4295_s27 }
 0x8e1   : > { %p3419_p8 = pnand %p3418_p2, %p4388_p13 }
 0x8e2   : > { %p3424_p1 = por %p3423_p9, %p3422_p12 }
 0x8e3   : > { %p3420_p6 = pneg %p3419_p8 }
 0x8e4   : > { %p3426_p11 = por %p3425_p4, %p3424_p1 }
 0x8e6   : > { %p3427_p0 = pnand %p3426_p11, %p3420_p6 }
 0x8e8   : > { %3430 = shalt.err (!%p3427_p0)
}
 0x8e9   : > { %s3507_s2 = smov 128   ;;  %s3508_s17 = smov 256  }
 0x8ea   : > { %s3509_s7 = smov 8  }
 0x8eb   : > { %3099 = dma.vmem_to_hbm [thread:$0]  (%p4388_p13), %s4289_s11, 1024, %s4295_s27, %s1924_s13, %s3507_s2, %s3508_s17, %s3509_s7  }
 0x8ec PF: > { %s1958_s30 = sand.u32 1, %s3473_s15   ;;  %p4389_p5 = scmp.ne.s32.totalorder %s4374_s8, 0 }
 0x8ed   : > { %p4390_p10 = scmp.ge.s32.totalorder %s3493_s20, 2  ;;  %s1959_s28 = scalar_lea.sflag [#allocation5], %s1958_s30 }
 0x8ef   : > { %p3116_p7 = pnand %p4390_p10, %p4389_p5 }
 0x8f1   : > { %3468 = dma.done.wait (!%p3116_p7), %s1959_s28, 1024  }
 0x8f2   : > { %3470 = vsyncadd (!%p3116_p7), %s1959_s28, 4294966272  ;;  %s24_s20 = sadd.s32 1, %s3493_s20   ;;  %s4391_s14 = sld [smem:[#allocation16_spill]] }
 0x8f3   : > { %p21_p3 = scmp.ge.s32.totalorder %s24_s20, 4   ;;  %s4392_s17 = sld [smem:[#allocation18_spill]] }
 0x8f4   : > { %s4393_s5 = sld [smem:[#allocation17_spill]]  ;;  %s4394_s15 = smov %s3477_s16 }
 0x8f5   : > { %s4396_s18 = smov %s3489_s19  ;;  %23 = sbr.rel (!%p21_p3) target bundleno = 12 (0xc), region = 130 }
 0x8f8   : > { %s4395_s16 = smov %s4391_s14 }
 0x8fa   : > { %s4397_s19 = smov %s4393_s5 }
 0x8fc   :  { %1964 = vsyncpa [#allocation4], 1 }
 0x8fd   :  { %1966 = vsyncpa [#allocation4 + $0x1], 1 }
 0x8fe   :  { %1967 = vsyncpa [#allocation7], 1 }
 0x8ff   :  { %1969 = vsyncpa [#allocation7 + $0x1], 1 }
 0x900   :  { %1970 = vsyncpa [#allocation10], 1 }
 0x901   :  { %1972 = vsyncpa [#allocation10 + $0x1], 1 }
 0x902   :  { %1973 = vsyncpa [#allocation5], 1 }
 0x903   :  { %1975 = vsyncpa [#allocation5 + $0x1], 1 }

</bundles_post_ra>
